<compile_context>
chip_gen: v7x
topology: tpu7x:2x2x1
jax: 0.10.0
libtpu: 0.0.40
codegen_flags: <defaults>
</compile_context>

<pallas_src>
import functools

import jax
import jax.numpy as jnp
from jax.experimental import pallas as pl
from jax.experimental.pallas import tpu as pltpu


# ------------------------------- Pallas kernels -------------------------------

def _ffc_lfu_kernel(xq_ref, w1bd_ref, b1q_ref, wlfu_ref, blfu_ref, w2_ref,
                    out_ref):
    """LFU branch at quarter resolution, batch merged into the lane axis.

    xq_ref : (4*Cg_in, TS) quadrant-stacked x_g slab ([TL|BL|TR|BR] on sublanes,
             lanes = batch-major quarter-res pixels).
    out_ref: (Cg_out, TS) = W2 @ relu(bn_lfu(W_lfu @ relu(bn1(conv1(x_g)))[:c4]_quadstacked))
    """
    y1 = jnp.maximum(
        jnp.dot(w1bd_ref[...], xq_ref[...],
                preferred_element_type=jnp.float32) + b1q_ref[...], 0.0)
    lf = jnp.maximum(
        jnp.dot(wlfu_ref[...], y1.astype(wlfu_ref.dtype),
                preferred_element_type=jnp.float32) + blfu_ref[...], 0.0)
    out_ref[...] = jnp.dot(w2_ref[...], lf.astype(w2_ref.dtype),
                           preferred_element_type=jnp.float32).astype(out_ref.dtype)


def _ffc_main_kernel(xl_ref, xg_ref, lfu_ref,
                     wxl_ref, wxg_ref, b1_ref, wfu_ref, bfu_ref, w2_ref,
                     oxl_ref, oxg_ref, *, out_cl, out_cg):
    """Fused FFC main path on one (C, TS) slab (batch index lives on the grid).

    Stage-1 weights are row-stacked:
        z = [Wl2l; Wl2g; 0] @ x_l + [Wg2l; 0; W1'] @ x_g + [0; 0; b1']
        out_l = z[:out_cl],  cl2g = z[out_cl:out_cl+out_cg],  y = relu(z[rest])
    then
        fu   = relu(Wfu' @ y + bfu')           (FourierUnit conv + folded BN + ReLU)
        cg2g = W2 @ (y + fu)
        out_g = cl2g + cg2g + lfu              (lfu = precomputed W2 @ tiled LFU)
    """
    xl = xl_ref[0]
    xg = xg_ref[0]
    z = (jnp.dot(wxl_ref[...], xl, preferred_element_type=jnp.float32)
         + jnp.dot(wxg_ref[...], xg, preferred_element_type=jnp.float32)
         + b1_ref[...])
    oxl_ref[0] = z[:out_cl].astype(oxl_ref.dtype)

    cl2g = z[out_cl:out_cl + out_cg]
    y = jnp.maximum(z[out_cl + out_cg:], 0.0)
    fu = jnp.maximum(
        jnp.dot(wfu_ref[...], y.astype(wfu_ref.dtype),
                preferred_element_type=jnp.float32) + bfu_ref[...], 0.0)
    cg2g = jnp.dot(w2_ref[...], (y + fu).astype(w2_ref.dtype),
                   preferred_element_type=jnp.float32)
    oxg_ref[0] = (cl2g + cg2g + lfu_ref[0].astype(jnp.float32)).astype(oxg_ref.dtype)


# ------------------------------- helpers --------------------------------------

def _fold_bn(w, bn, eps=1e-5):
    """Fold eval-mode BatchNorm into a preceding bias-free 1x1 conv."""
    gamma, beta, mean, var = bn
    scale = gamma / jnp.sqrt(var + eps)
    w_f = (w * scale[:, None]).astype(jnp.float32)
    b_f = (beta - mean * scale)[:, None].astype(jnp.float32)   # (Co, 1)
    return w_f, b_f


def _vmem_capacity_bytes():
    try:
        info = pltpu.get_tpu_info()
        for name in ("vmem_capacity_bytes", "vmem_bytes", "vmem_size_bytes"):
            v = getattr(info, name, None)
            if v:
                return int(v)
    except Exception:
        pass
    return 128 << 20


def _pick_lane_tile(total, per_lane_bytes, budget, prefer_multi=False):
    """Lane-tile size dividing `total`; prefers 128-multiples and large tiles."""
    cap = max(1, budget // max(per_lane_bytes, 1))
    if prefer_multi and total >= 256:
        cap = min(cap, total // 2)          # keep >=2 grid steps (v7x dual-TC)
    if total <= cap:
        return total
    cap = min(cap, total)
    if total % 128 == 0:
        best, d = 128, 128
        while d <= cap:
            if total % d == 0:
                best = d
            d += 128
        return best
    # Unaligned spatial extent: largest divisor under the cap (masked stores,
    # but stays inside the VMEM budget).
    best, i = 1, 1
    while i * i <= total:
        if total % i == 0:
            for c in (i, total // i):
                if c <= cap and c > best:
                    best = c
        i += 1
    return best


# ------------------------------- wrapper ---------------------------------------

def ffc_forward_pallas(x_l, x_g, raw):
    """FFC forward. x_l: (N, in_cl, H, W), x_g: (N, in_cg, H, W) -> (out_xl, out_xg)."""
    N, in_cl, H, W = x_l.shape
    _, in_cg, _, _ = x_g.shape
    HW = H * W
    out_cl = raw['wl2l'].shape[0]
    out_cg = raw['w2'].shape[0]
    cg2 = raw['w1'].shape[0]
    c4 = cg2 // 4
    assert cg2 % 4 == 0 and c4 >= 1 and H % 2 == 0 and W % 2 == 0, \
        "enable_lfu path needs (out_channels*ratio_gout)//2 divisible by 4 and even H, W"

    f32 = jnp.float32
    in_dtype = x_l.dtype
    isz = jnp.dtype(in_dtype).itemsize
    # MXU operand dtype: keep bf16 end-to-end when activations are bf16.
    cdt = jnp.bfloat16 if in_dtype == jnp.bfloat16 else f32

    # Generation-aware VMEM budget (v7x: 64 MiB per TC -> cap at 40 MiB;
    # v5e/v6e: 128 MiB -> ~96 MiB).
    vmem_cap = _vmem_capacity_bytes()
    vmem_limit = min((40 << 20) if vmem_cap <= (64 << 20) else (96 << 20),
                     max(int(vmem_cap * 0.75), 16 << 20))

    # ---- fold BatchNorms (eval semantics) into the preceding 1x1 convs ----
    w1_f, b1_f = _fold_bn(raw['w1'], raw['bn1'])
    wfu_f, bfu_f = _fold_bn(raw['wfu'], raw['bnfu'])
    wlfu_f, blfu_f = _fold_bn(raw['wlfu'], raw['bnlfu'])
    wl2l = raw['wl2l'].astype(f32)
    wg2l = raw['wg2l'].astype(f32)
    wl2g = raw['wl2g'].astype(f32)
    w2 = raw['w2'].astype(f32)

    # =================== Pass A: LFU branch at quarter resolution ==================
    Hh, Wh = H // 2, W // 2
    HWq = Hh * Wh
    # conv1/BN/ReLU are pointwise, so the quadrant gather commutes with them:
    # gather x_g quadrants (channel order [TL, BL, TR, BR] matching torch split/cat),
    # merge batch into lanes, and apply block-diagonal folded conv1 in-kernel.
    quads = jnp.stack([x_g[:, :, :Hh, :Wh], x_g[:, :, Hh:, :Wh],
                       x_g[:, :, :Hh, Wh:], x_g[:, :, Hh:, Wh:]], axis=0)
    xgq = quads.transpose(0, 2, 1, 3, 4).reshape(4 * in_cg, N * HWq).astype(in_dtype)
    L = N * HWq
    P = ((L + 127) // 128) * 128            # lane-dense (128-multiple) padded extent
    if P != L:
        xgq = jnp.pad(xgq, ((0, 0), (0, P - L)))

    w1bd = jnp.kron(jnp.eye(4, dtype=f32), w1_f[:c4]).astype(cdt)   # (cg2, 4*in_cg)
    b1q = jnp.tile(b1_f[:c4], (4, 1))                               # (cg2, 1) f32
    wlfu_c = wlfu_f.astype(cdt)
    w2_c = w2.astype(cdt)

    wbytes_a = 2 * sum(int(a.size) * a.dtype.itemsize
                       for a in (w1bd, b1q, wlfu_c, blfu_f, w2_c))
    budget_a = max(vmem_limit - wbytes_a - (4 << 20), 1 << 20)
    per_lane_a = 2 * (4 * in_cg + out_cg) * isz + 4 * (3 * cg2 + out_cg)
    ts_a = _pick_lane_tile(P, per_lane_a, budget_a, prefer_multi=True)

    contrib = pl.pallas_call(
        _ffc_lfu_kernel,
        out_shape=jax.ShapeDtypeStruct((out_cg, P), in_dtype),
        grid_spec=pltpu.PrefetchScalarGridSpec(
            num_scalar_prefetch=0,
            grid=(P // ts_a,),
            in_specs=[
                pl.BlockSpec((4 * in_cg, ts_a), lambda s: (0, s)),
                pl.BlockSpec(w1bd.shape, lambda s: (0, 0)),
                pl.BlockSpec(b1q.shape, lambda s: (0, 0)),
                pl.BlockSpec(wlfu_c.shape, lambda s: (0, 0)),
                pl.BlockSpec(blfu_f.shape, lambda s: (0, 0)),
                pl.BlockSpec(w2_c.shape, lambda s: (0, 0)),
            ],
            out_specs=pl.BlockSpec((out_cg, ts_a), lambda s: (0, s)),
        ),
        compiler_params=pltpu.CompilerParams(
            dimension_semantics=("parallel",), vmem_limit_bytes=vmem_limit),
    )(xgq, w1bd, b1q, wlfu_c, blfu_f, w2_c)

    # conv2 is 1x1, so it commutes with the 2x2 spatial tiling; tile the quarter-res
    # contribution back to full resolution (XLA layout op), in the INPUT dtype.
    contrib = contrib[:, :L].reshape(out_cg, N, Hh, Wh).transpose(1, 0, 2, 3)
    lfu_full = jnp.tile(contrib, (1, 1, 2, 2)).reshape(N, out_cg, HW)

    # ======================= Pass B: fused main FFC kernel =========================
    xl2 = x_l.reshape(N, in_cl, HW)
    xg2 = x_g.reshape(N, in_cg, HW)

    # Stacked stage-1 weights (one fat dot per input slab).
    M1 = out_cl + out_cg + cg2
    wxl = jnp.concatenate([wl2l, wl2g, jnp.zeros((cg2, in_cl), f32)], axis=0).astype(cdt)
    wxg = jnp.concatenate([wg2l, jnp.zeros((out_cg, in_cg), f32), w1_f], axis=0).astype(cdt)
    b1_all = jnp.concatenate([jnp.zeros((out_cl + out_cg, 1), f32), b1_f], axis=0)
    wfu_c = wfu_f.astype(cdt)

    wbytes_b = 2 * sum(int(a.size) * a.dtype.itemsize
                       for a in (wxl, wxg, b1_all, wfu_c, bfu_f, w2_c))
    budget_b = max(vmem_limit - wbytes_b - (4 << 20), 1 << 20)
    per_lane_b = (2 * (in_cl + in_cg + out_cg) * isz        # inputs (dbl-buffered)
                  + 2 * (out_cl + out_cg) * isz             # outputs (dbl-buffered)
                  + 4 * (M1 + 3 * cg2 + 2 * out_cg))        # f32 temporaries
    ts = _pick_lane_tile(HW, per_lane_b, budget_b, prefer_multi=(N < 2))

    kernel_b = functools.partial(_ffc_main_kernel, out_cl=out_cl, out_cg=out_cg)

    def dspec(c):
        return pl.BlockSpec((1, c, ts), lambda b, s: (b, 0, s))

    def wspec(arr):
        return pl.BlockSpec(arr.shape, lambda b, s: (0, 0))

    out_xl, out_xg = pl.pallas_call(
        kernel_b,
        out_shape=(jax.ShapeDtypeStruct((N, out_cl, HW), in_dtype),
                   jax.ShapeDtypeStruct((N, out_cg, HW), in_dtype)),
        grid_spec=pltpu.PrefetchScalarGridSpec(
            num_scalar_prefetch=0,
            grid=(N, HW // ts),
            in_specs=[
                dspec(in_cl), dspec(in_cg), dspec(out_cg),
                wspec(wxl), wspec(wxg), wspec(b1_all),
                wspec(wfu_c), wspec(bfu_f), wspec(w2_c),
            ],
            out_specs=[dspec(out_cl), dspec(out_cg)],
        ),
        compiler_params=pltpu.CompilerParams(
            dimension_semantics=("parallel", "parallel"), vmem_limit_bytes=vmem_limit),
    )(xl2, xg2, lfu_full, wxl, wxg, b1_all, wfu_c, bfu_f, w2_c)

    return (out_xl.reshape(N, out_cl, H, W), out_xg.reshape(N, out_cg, H, W))


# ------------------------------- pure-JAX reference ----------------------------

def _bn_ref(x, bn, eps=1e-5):
    gamma, beta, mean, var = bn
    inv = gamma / jnp.sqrt(var + eps)
    return (x - mean[None, :, None, None]) * inv[None, :, None, None] \
        + beta[None, :, None, None]


def ffc_forward_ref(x_l, x_g, raw):
    """Mirrors the PyTorch FFC.forward (kernel_size=1, stride=1, enable_lfu=True)."""
    conv = lambda w, x: jnp.einsum('oi,nihw->nohw', w, x)
    out_xl = conv(raw['wl2l'], x_l) + conv(raw['wg2l'], x_g)

    cl2g = conv(raw['wl2g'], x_l)
    # SpectralTransform
    y = jax.nn.relu(_bn_ref(conv(raw['w1'], x_g), raw['bn1']))
    fu = jax.nn.relu(_bn_ref(conv(raw['wfu'], y), raw['bnfu']))
    n, c, h, w = y.shape
    xs = y[:, :c // 4]
    xs = jnp.concatenate(jnp.split(xs, 2, axis=-2), axis=1)
    xs = jnp.concatenate(jnp.split(xs, 2, axis=-1), axis=1)
    xs = jax.nn.relu(_bn_ref(conv(raw['wlfu'], xs), raw['bnlfu']))
    xs = jnp.tile(xs, (1, 1, 2, 2))
    cg2g = conv(raw['w2'], y + fu + xs)
    return out_xl, cl2g + cg2g


# ------------------------------- demo params -----------------------------------

def make_ffc_params(key, in_cl, in_cg, out_cl, out_cg, dtype=jnp.float32):
    cg2 = out_cg // 2
    ks = jax.random.split(key, 10)

    def w(k, co, ci):
        return 0.1 * jax.random.normal(k, (co, ci), dtype)

    def bn(k):
        k1, k2, k3, k4 = jax.random.split(k, 4)
        gamma = 1.0 + 0.1 * jax.random.normal(k1, (cg2,), dtype)
        beta = 0.1 * jax.random.normal(k2, (cg2,), dtype)
        mean = 0.1 * jax.random.normal(k3, (cg2,), dtype)
        var = 1.0 + 0.1 * jax.random.uniform(k4, (cg2,), dtype)
        return (gamma, beta, mean, var)

    return dict(
        wl2l=w(ks[0], out_cl, in_cl),
        wg2l=w(ks[1], out_cl, in_cg),
        wl2g=w(ks[2], out_cg, in_cl),
        w1=w(ks[3], cg2, in_cg), bn1=bn(ks[4]),
        wfu=w(ks[5], cg2, cg2), bnfu=bn(ks[6]),
        wlfu=w(ks[7], cg2, cg2), bnlfu=bn(ks[8]),
        w2=w(ks[9], out_cg, cg2),
    )


if __name__ == "__main__":
    # TODO(synk): gated / cross-attention branches (disabled by module defaults)
    #             are not implemented in the Pallas path.
    in_channels, out_channels = 32, 32
    ratio_gin, ratio_gout = 0.5, 0.5
    N, H, W = 2, 16, 16

    in_cg = int(in_channels * ratio_gin)
    in_cl = in_channels - in_cg
    out_cg = int(out_channels * ratio_gout)
    out_cl = out_channels - out_cg

    key = jax.random.PRNGKey(0)
    k_p, k_l, k_g = jax.random.split(key, 3)
    raw = make_ffc_params(k_p, in_cl, in_cg, out_cl, out_cg)

    x_l = jax.random.normal(k_l, (N, in_cl, H, W), jnp.float32)
    x_g = jax.random.normal(k_g, (N, in_cg, H, W), jnp.float32)

    ffc = jax.jit(ffc_forward_pallas)
    o_l, o_g = ffc(x_l, x_g, raw)
    jax.block_until_ready((o_l, o_g))

    r_l, r_g = ffc_forward_ref(x_l, x_g, raw)
    assert o_l.shape == (N, out_cl, H, W) and o_g.shape == (N, out_cg, H, W)
    assert jnp.allclose(o_l, r_l, atol=1e-3, rtol=1e-3), \
        float(jnp.max(jnp.abs(o_l - r_l)))
    assert jnp.allclose(o_g, r_g, atol=1e-3, rtol=1e-3), \
        float(jnp.max(jnp.abs(o_g - r_g)))

    print("KERNEL_OK")
</pallas_src>

<mosaic_0001>
module attributes {stable_mosaic.version = 11 : i64} {
  func.func @_ffc_lfu_kernel(%arg0: i32, %arg1: memref<64x128xf32, #tpu.memory_space<vmem>>, %arg2: memref<8x64xf32, #tpu.memory_space<vmem>>, %arg3: memref<8x1xf32, #tpu.memory_space<vmem>>, %arg4: memref<8x8xf32, #tpu.memory_space<vmem>>, %arg5: memref<8x1xf32, #tpu.memory_space<vmem>>, %arg6: memref<16x8xf32, #tpu.memory_space<vmem>>, %arg7: memref<16x128xf32, #tpu.memory_space<vmem>>) attributes {dimension_semantics = [#tpu.dimension_semantics<parallel>], iteration_bounds = array<i64: 1>, scalar_prefetch = 0 : i64, scratch_operands = 0 : i64, tpu.core_type = #tpu.core_type<tc>, window_params = [{transform_indices = @transform_0, window_bounds = array<i64: 64, 128>}, {pipeline_mode = #tpu.pipeline_mode<synchronous>, transform_indices = @transform_1, window_bounds = array<i64: 8, 64>}, {pipeline_mode = #tpu.pipeline_mode<synchronous>, transform_indices = @transform_2, window_bounds = array<i64: 8, 1>}, {pipeline_mode = #tpu.pipeline_mode<synchronous>, transform_indices = @transform_3, window_bounds = array<i64: 8, 8>}, {pipeline_mode = #tpu.pipeline_mode<synchronous>, transform_indices = @transform_4, window_bounds = array<i64: 8, 1>}, {pipeline_mode = #tpu.pipeline_mode<synchronous>, transform_indices = @transform_5, window_bounds = array<i64: 16, 8>}, {transform_indices = @transform_6, window_bounds = array<i64: 16, 128>}]} {
    %c0 = arith.constant 0 : index
    %c0_0 = arith.constant 0 : index
    %0 = vector.load %arg2[%c0, %c0_0] : memref<8x64xf32, #tpu.memory_space<vmem>>, vector<8x64xf32>
    %c0_1 = arith.constant 0 : index
    %c0_2 = arith.constant 0 : index
    %1 = vector.load %arg1[%c0_1, %c0_2] : memref<64x128xf32, #tpu.memory_space<vmem>>, vector<64x128xf32>
    %cst = arith.constant dense<0.000000e+00> : vector<8x128xf32>
    %2 = tpu.matmul %0, %1, %cst {dimension_numbers = #tpu.dot_dimension_numbers<[1], [0], [0], [1], [0, 0, 1, 1], [], []>} : vector<8x64xf32>, vector<64x128xf32>, vector<8x128xf32> -> vector<8x128xf32>
    %c0_3 = arith.constant 0 : index
    %c0_4 = arith.constant 0 : index
    %3 = vector.load %arg3[%c0_3, %c0_4] : memref<8x1xf32, #tpu.memory_space<vmem>>, vector<8x1xf32>
    %4 = vector.broadcast %3 : vector<8x1xf32> to vector<8x128xf32>
    %5 = arith.addf %2, %4 : vector<8x128xf32>
    %cst_5 = arith.constant 0.000000e+00 : f32
    %6 = vector.broadcast %cst_5 : f32 to vector<8x128xf32>
    %7 = arith.maximumf %5, %6 : vector<8x128xf32>
    %c0_6 = arith.constant 0 : index
    %c0_7 = arith.constant 0 : index
    %8 = vector.load %arg4[%c0_6, %c0_7] : memref<8x8xf32, #tpu.memory_space<vmem>>, vector<8x8xf32>
    %cst_8 = arith.constant dense<0.000000e+00> : vector<8x128xf32>
    %9 = tpu.matmul %8, %7, %cst_8 {dimension_numbers = #tpu.dot_dimension_numbers<[1], [0], [0], [1], [0, 0, 1, 1], [], []>} : vector<8x8xf32>, vector<8x128xf32>, vector<8x128xf32> -> vector<8x128xf32>
    %c0_9 = arith.constant 0 : index
    %c0_10 = arith.constant 0 : index
    %10 = vector.load %arg5[%c0_9, %c0_10] : memref<8x1xf32, #tpu.memory_space<vmem>>, vector<8x1xf32>
    %11 = vector.broadcast %10 : vector<8x1xf32> to vector<8x128xf32>
    %12 = arith.addf %9, %11 : vector<8x128xf32>
    %cst_11 = arith.constant 0.000000e+00 : f32
    %13 = vector.broadcast %cst_11 : f32 to vector<8x128xf32>
    %14 = arith.maximumf %12, %13 : vector<8x128xf32>
    %c0_12 = arith.constant 0 : index
    %c0_13 = arith.constant 0 : index
    %15 = vector.load %arg6[%c0_12, %c0_13] : memref<16x8xf32, #tpu.memory_space<vmem>>, vector<16x8xf32>
    %cst_14 = arith.constant dense<0.000000e+00> : vector<16x128xf32>
    %16 = tpu.matmul %15, %14, %cst_14 {dimension_numbers = #tpu.dot_dimension_numbers<[1], [0], [0], [1], [0, 0, 1, 1], [], []>} : vector<16x8xf32>, vector<8x128xf32>, vector<16x128xf32> -> vector<16x128xf32>
    %c0_15 = arith.constant 0 : index
    %c0_16 = arith.constant 0 : index
    %17 = vector.load %arg7[%c0_15, %c0_16] : memref<16x128xf32, #tpu.memory_space<vmem>>, vector<16x128xf32>
    tpu.vector_store %arg7[%c0_15, %c0_16], %16 {strides = array<i32>} : memref<16x128xf32, #tpu.memory_space<vmem>>, vector<16x128xf32>,
    return
  }
  func.func @transform_0(%arg0: i32) -> (i32, i32) {
    %c0_i32 = arith.constant 0 : i32
    %c0_i32_0 = arith.constant 0 : i32
    return %c0_i32, %arg0 : i32, i32
  }
  func.func @transform_1(%arg0: i32) -> (i32, i32) {
    %c0_i32 = arith.constant 0 : i32
    %c0_i32_0 = arith.constant 0 : i32
    %c0_i32_1 = arith.constant 0 : i32
    return %c0_i32, %c0_i32_0 : i32, i32
  }
  func.func @transform_2(%arg0: i32) -> (i32, i32) {
    %c0_i32 = arith.constant 0 : i32
    %c0_i32_0 = arith.constant 0 : i32
    %c0_i32_1 = arith.constant 0 : i32
    return %c0_i32, %c0_i32_0 : i32, i32
  }
  func.func @transform_3(%arg0: i32) -> (i32, i32) {
    %c0_i32 = arith.constant 0 : i32
    %c0_i32_0 = arith.constant 0 : i32
    %c0_i32_1 = arith.constant 0 : i32
    return %c0_i32, %c0_i32_0 : i32, i32
  }
  func.func @transform_4(%arg0: i32) -> (i32, i32) {
    %c0_i32 = arith.constant 0 : i32
    %c0_i32_0 = arith.constant 0 : i32
    %c0_i32_1 = arith.constant 0 : i32
    return %c0_i32, %c0_i32_0 : i32, i32
  }
  func.func @transform_5(%arg0: i32) -> (i32, i32) {
    %c0_i32 = arith.constant 0 : i32
    %c0_i32_0 = arith.constant 0 : i32
    %c0_i32_1 = arith.constant 0 : i32
    return %c0_i32, %c0_i32_0 : i32, i32
  }
  func.func @transform_6(%arg0: i32) -> (i32, i32) {
    %c0_i32 = arith.constant 0 : i32
    %c0_i32_0 = arith.constant 0 : i32
    return %c0_i32, %arg0 : i32, i32
  }
}

module attributes {stable_mosaic.version = 11 : i64} {
  func.func @_ffc_main_kernel(%arg0: i32, %arg1: i32, %arg2: memref<1x16x256xf32, #tpu.memory_space<vmem>>, %arg3: memref<1x16x256xf32, #tpu.memory_space<vmem>>, %arg4: memref<1x16x256xf32, #tpu.memory_space<vmem>>, %arg5: memref<40x16xf32, #tpu.memory_space<vmem>>, %arg6: memref<40x16xf32, #tpu.memory_space<vmem>>, %arg7: memref<40x1xf32, #tpu.memory_space<vmem>>, %arg8: memref<8x8xf32, #tpu.memory_space<vmem>>, %arg9: memref<8x1xf32, #tpu.memory_space<vmem>>, %arg10: memref<16x8xf32, #tpu.memory_space<vmem>>, %arg11: memref<1x16x256xf32, #tpu.memory_space<vmem>>, %arg12: memref<1x16x256xf32, #tpu.memory_space<vmem>>) attributes {dimension_semantics = [#tpu.dimension_semantics<parallel>, #tpu.dimension_semantics<parallel>], iteration_bounds = array<i64: 2, 1>, scalar_prefetch = 0 : i64, scratch_operands = 0 : i64, tpu.core_type = #tpu.core_type<tc>, window_params = [{transform_indices = @transform_0, window_bounds = array<i64: 1, 16, 256>}, {transform_indices = @transform_1, window_bounds = array<i64: 1, 16, 256>}, {transform_indices = @transform_2, window_bounds = array<i64: 1, 16, 256>}, {pipeline_mode = #tpu.pipeline_mode<synchronous>, transform_indices = @transform_3, window_bounds = array<i64: 40, 16>}, {pipeline_mode = #tpu.pipeline_mode<synchronous>, transform_indices = @transform_4, window_bounds = array<i64: 40, 16>}, {pipeline_mode = #tpu.pipeline_mode<synchronous>, transform_indices = @transform_5, window_bounds = array<i64: 40, 1>}, {pipeline_mode = #tpu.pipeline_mode<synchronous>, transform_indices = @transform_6, window_bounds = array<i64: 8, 8>}, {pipeline_mode = #tpu.pipeline_mode<synchronous>, transform_indices = @transform_7, window_bounds = array<i64: 8, 1>}, {pipeline_mode = #tpu.pipeline_mode<synchronous>, transform_indices = @transform_8, window_bounds = array<i64: 16, 8>}, {transform_indices = @transform_9, window_bounds = array<i64: 1, 16, 256>}, {transform_indices = @transform_10, window_bounds = array<i64: 1, 16, 256>}]} {
    %c0 = arith.constant 0 : index
    %c0_0 = arith.constant 0 : index
    %c0_1 = arith.constant 0 : index
    %0 = vector.load %arg2[%c0, %c0_0, %c0_1] : memref<1x16x256xf32, #tpu.memory_space<vmem>>, vector<1x16x256xf32>
    %1 = vector.shape_cast %0 : vector<1x16x256xf32> to vector<16x256xf32>
    %c0_2 = arith.constant 0 : index
    %c0_3 = arith.constant 0 : index
    %c0_4 = arith.constant 0 : index
    %2 = vector.load %arg3[%c0_2, %c0_3, %c0_4] : memref<1x16x256xf32, #tpu.memory_space<vmem>>, vector<1x16x256xf32>
    %3 = vector.shape_cast %2 : vector<1x16x256xf32> to vector<16x256xf32>
    %c0_5 = arith.constant 0 : index
    %c0_6 = arith.constant 0 : index
    %4 = vector.load %arg5[%c0_5, %c0_6] : memref<40x16xf32, #tpu.memory_space<vmem>>, vector<40x16xf32>
    %cst = arith.constant dense<0.000000e+00> : vector<40x256xf32>
    %5 = tpu.matmul %4, %1, %cst {dimension_numbers = #tpu.dot_dimension_numbers<[1], [0], [0], [1], [0, 0, 1, 1], [], []>} : vector<40x16xf32>, vector<16x256xf32>, vector<40x256xf32> -> vector<40x256xf32>
    %c0_7 = arith.constant 0 : index
    %c0_8 = arith.constant 0 : index
    %6 = vector.load %arg6[%c0_7, %c0_8] : memref<40x16xf32, #tpu.memory_space<vmem>>, vector<40x16xf32>
    %cst_9 = arith.constant dense<0.000000e+00> : vector<40x256xf32>
    %7 = tpu.matmul %6, %3, %cst_9 {dimension_numbers = #tpu.dot_dimension_numbers<[1], [0], [0], [1], [0, 0, 1, 1], [], []>} : vector<40x16xf32>, vector<16x256xf32>, vector<40x256xf32> -> vector<40x256xf32>
    %8 = arith.addf %5, %7 : vector<40x256xf32>
    %c0_10 = arith.constant 0 : index
    %c0_11 = arith.constant 0 : index
    %9 = vector.load %arg7[%c0_10, %c0_11] : memref<40x1xf32, #tpu.memory_space<vmem>>, vector<40x1xf32>
    %10 = vector.broadcast %9 : vector<40x1xf32> to vector<40x256xf32>
    %11 = arith.addf %8, %10 : vector<40x256xf32>
    %12 = vector.extract_strided_slice %11 {offsets = [0, 0], sizes = [16, 256], strides = [1, 1]} : vector<40x256xf32> to vector<16x256xf32>
    %c0_12 = arith.constant 0 : index
    %c0_13 = arith.constant 0 : index
    %c0_14 = arith.constant 0 : index
    %13 = vector.load %arg11[%c0_12, %c0_13, %c0_14] : memref<1x16x256xf32, #tpu.memory_space<vmem>>, vector<1x16x256xf32>
    %14 = vector.shape_cast %13 : vector<1x16x256xf32> to vector<16x256xf32>
    %15 = vector.shape_cast %12 : vector<16x256xf32> to vector<1x16x256xf32>
    tpu.vector_store %arg11[%c0_12, %c0_13, %c0_14], %15 {strides = array<i32>} : memref<1x16x256xf32, #tpu.memory_space<vmem>>, vector<1x16x256xf32>,
    %16 = vector.extract_strided_slice %11 {offsets = [16, 0], sizes = [16, 256], strides = [1, 1]} : vector<40x256xf32> to vector<16x256xf32>
    %17 = vector.extract_strided_slice %11 {offsets = [32, 0], sizes = [8, 256], strides = [1, 1]} : vector<40x256xf32> to vector<8x256xf32>
    %cst_15 = arith.constant 0.000000e+00 : f32
    %18 = vector.broadcast %cst_15 : f32 to vector<8x256xf32>
    %19 = arith.maximumf %17, %18 : vector<8x256xf32>
    %c0_16 = arith.constant 0 : index
    %c0_17 = arith.constant 0 : index
    %20 = vector.load %arg8[%c0_16, %c0_17] : memref<8x8xf32, #tpu.memory_space<vmem>>, vector<8x8xf32>
    %cst_18 = arith.constant dense<0.000000e+00> : vector<8x256xf32>
    %21 = tpu.matmul %20, %19, %cst_18 {dimension_numbers = #tpu.dot_dimension_numbers<[1], [0], [0], [1], [0, 0, 1, 1], [], []>} : vector<8x8xf32>, vector<8x256xf32>, vector<8x256xf32> -> vector<8x256xf32>
    %c0_19 = arith.constant 0 : index
    %c0_20 = arith.constant 0 : index
    %22 = vector.load %arg9[%c0_19, %c0_20] : memref<8x1xf32, #tpu.memory_space<vmem>>, vector<8x1xf32>
    %23 = vector.broadcast %22 : vector<8x1xf32> to vector<8x256xf32>
    %24 = arith.addf %21, %23 : vector<8x256xf32>
    %cst_21 = arith.constant 0.000000e+00 : f32
    %25 = vector.broadcast %cst_21 : f32 to vector<8x256xf32>
    %26 = arith.maximumf %24, %25 : vector<8x256xf32>
    %c0_22 = arith.constant 0 : index
    %c0_23 = arith.constant 0 : index
    %27 = vector.load %arg10[%c0_22, %c0_23] : memref<16x8xf32, #tpu.memory_space<vmem>>, vector<16x8xf32>
    %28 = arith.addf %19, %26 : vector<8x256xf32>
    %cst_24 = arith.constant dense<0.000000e+00> : vector<16x256xf32>
    %29 = tpu.matmul %27, %28, %cst_24 {dimension_numbers = #tpu.dot_dimension_numbers<[1], [0], [0], [1], [0, 0, 1, 1], [], []>} : vector<16x8xf32>, vector<8x256xf32>, vector<16x256xf32> -> vector<16x256xf32>
    %30 = arith.addf %16, %29 : vector<16x256xf32>
    %c0_25 = arith.constant 0 : index
    %c0_26 = arith.constant 0 : index
    %c0_27 = arith.constant 0 : index
    %31 = vector.load %arg4[%c0_25, %c0_26, %c0_27] : memref<1x16x256xf32, #tpu.memory_space<vmem>>, vector<1x16x256xf32>
    %32 = vector.shape_cast %31 : vector<1x16x256xf32> to vector<16x256xf32>
    %33 = arith.addf %30, %32 : vector<16x256xf32>
    %c0_28 = arith.constant 0 : index
    %c0_29 = arith.constant 0 : index
    %c0_30 = arith.constant 0 : index
    %34 = vector.load %arg12[%c0_28, %c0_29, %c0_30] : memref<1x16x256xf32, #tpu.memory_space<vmem>>, vector<1x16x256xf32>
    %35 = vector.shape_cast %34 : vector<1x16x256xf32> to vector<16x256xf32>
    %36 = vector.shape_cast %33 : vector<16x256xf32> to vector<1x16x256xf32>
    tpu.vector_store %arg12[%c0_28, %c0_29, %c0_30], %36 {strides = array<i32>} : memref<1x16x256xf32, #tpu.memory_space<vmem>>, vector<1x16x256xf32>,
    return
  }
  func.func @transform_0(%arg0: i32, %arg1: i32) -> (i32, i32, i32) {
    %c0_i32 = arith.constant 0 : i32
    %c0_i32_0 = arith.constant 0 : i32
    return %arg0, %c0_i32, %arg1 : i32, i32, i32
  }
  func.func @transform_1(%arg0: i32, %arg1: i32) -> (i32, i32, i32) {
    %c0_i32 = arith.constant 0 : i32
    %c0_i32_0 = arith.constant 0 : i32
    return %arg0, %c0_i32, %arg1 : i32, i32, i32
  }
  func.func @transform_2(%arg0: i32, %arg1: i32) -> (i32, i32, i32) {
    %c0_i32 = arith.constant 0 : i32
    %c0_i32_0 = arith.constant 0 : i32
    return %arg0, %c0_i32, %arg1 : i32, i32, i32
  }
  func.func @transform_3(%arg0: i32, %arg1: i32) -> (i32, i32) {
    %c0_i32 = arith.constant 0 : i32
    %c0_i32_0 = arith.constant 0 : i32
    %c0_i32_1 = arith.constant 0 : i32
    return %c0_i32, %c0_i32_0 : i32, i32
  }
  func.func @transform_4(%arg0: i32, %arg1: i32) -> (i32, i32) {
    %c0_i32 = arith.constant 0 : i32
    %c0_i32_0 = arith.constant 0 : i32
    %c0_i32_1 = arith.constant 0 : i32
    return %c0_i32, %c0_i32_0 : i32, i32
  }
  func.func @transform_5(%arg0: i32, %arg1: i32) -> (i32, i32) {
    %c0_i32 = arith.constant 0 : i32
    %c0_i32_0 = arith.constant 0 : i32
    %c0_i32_1 = arith.constant 0 : i32
    return %c0_i32, %c0_i32_0 : i32, i32
  }
  func.func @transform_6(%arg0: i32, %arg1: i32) -> (i32, i32) {
    %c0_i32 = arith.constant 0 : i32
    %c0_i32_0 = arith.constant 0 : i32
    %c0_i32_1 = arith.constant 0 : i32
    return %c0_i32, %c0_i32_0 : i32, i32
  }
  func.func @transform_7(%arg0: i32, %arg1: i32) -> (i32, i32) {
    %c0_i32 = arith.constant 0 : i32
    %c0_i32_0 = arith.constant 0 : i32
    %c0_i32_1 = arith.constant 0 : i32
    return %c0_i32, %c0_i32_0 : i32, i32
  }
  func.func @transform_8(%arg0: i32, %arg1: i32) -> (i32, i32) {
    %c0_i32 = arith.constant 0 : i32
    %c0_i32_0 = arith.constant 0 : i32
    %c0_i32_1 = arith.constant 0 : i32
    return %c0_i32, %c0_i32_0 : i32, i32
  }
  func.func @transform_9(%arg0: i32, %arg1: i32) -> (i32, i32, i32) {
    %c0_i32 = arith.constant 0 : i32
    %c0_i32_0 = arith.constant 0 : i32
    return %arg0, %c0_i32, %arg1 : i32, i32, i32
  }
  func.func @transform_10(%arg0: i32, %arg1: i32) -> (i32, i32, i32) {
    %c0_i32 = arith.constant 0 : i32
    %c0_i32_0 = arith.constant 0 : i32
    return %arg0, %c0_i32, %arg1 : i32, i32, i32
  }
}

</mosaic_0001>

<bundles_post_ra>
// kernel: ffc_forward_pallas.2
= control target key start
LH: loop header
LB: loop body
LE: loop exit
PB: predicated region body
PF: predicated region fallthrough
CT: control target
= control target key end

     0   :  { %11 = vsyncpa [#allocation3], 0  ;;  %s753_s0 = inlined_call_operand.hbm [shape: f32[64,128], index: 0, kind: input, shape index: {}]   ;;  %s754_s1 = inlined_call_operand.hbm [shape: f32[8,64], index: 1, kind: input, shape index: {}]   ;;  %s755_s2 = inlined_call_operand.hbm [shape: f32[8,1], index: 2, kind: input, shape index: {}]   ;;  %s756_s3 = inlined_call_operand.hbm [shape: f32[8,8], index: 3, kind: input, shape index: {}]   ;;  %s757_s4 = inlined_call_operand.hbm [shape: f32[8,1], index: 4, kind: input, shape index: {}]   ;;  %s758_s5 = inlined_call_operand.hbm [shape: f32[16,8], index: 5, kind: input, shape index: {}]   ;;  %s759_s6 = inlined_call_operand.hbm [shape: f32[16,128], index: 6, kind: output, shape index: {}]  }
   0x1   :  { %12 = vsyncpa [#allocation6], 0 }
   0x2   :  { %13 = vsyncpa [#allocation9], 0 }
   0x3   :  { %14 = vsyncpa [#allocation12], 0 }
   0x4   :  { %15 = vsyncpa [#allocation4], 0  ;;  %s612_s21 = smov [#allocation5]   ;;  %s613_s23 = smov [#allocation8]  }
   0x5   :  { %s34_s22 = sshll.u32 %s612_s21, 4  ;;  %s54_s24 = sshll.u32 %s613_s23, 4  ;;  %s35_s22 = int_to_ptr.vmem [resolvable:$true] %s34_s22  ;;  %s55_s24 = int_to_ptr.vmem [resolvable:$true] %s54_s24 }
   0x6   :  { %s448_s27 = scalar_lea.hbm %s754_s1, 128 }
   0x7   :  { %p449_p0 = scmp.ne.s32.totalorder %s754_s1, %s448_s27  ;;  %p452_p1 = scmp.lt.u32.totalorder %s448_s27, %s754_s1 }
   0x9   :  { %p454_p2 = pnand %p452_p1, %p449_p0 }
   0xb   :  { %457 = shalt.err (!%p454_p2)
}
   0xc   :  { %s458_s8 = scalar_lea.vmem %s35_s22, 128  ;;  %p463_p4 = scmp.lt.s32.totalorder %s35_s22, %s35_s22 }
   0xd   :  { %p459_p3 = scmp.ne.s32.totalorder %s35_s22, %s458_s8  ;;  %p464_p5 = scmp.lt.s32.totalorder %s458_s8, %s458_s8 }
   0xf   :  { %p465_p6 = por %p464_p5, %p463_p4 }
  0x11   :  { %p466_p7 = pnand %p465_p6, %p459_p3 }
  0x13   :  { %469 = shalt.err (!%p466_p7)
}
  0x14   :  { %37 = dma.hbm_to_vmem [thread:$0]  %s754_s1, 128, %s35_s22, [#allocation6]  }
  0x15   :  { %s470_s13 = scalar_lea.hbm %s756_s3, 128 }
  0x16   :  { %p471_p8 = scmp.ne.s32.totalorder %s756_s3, %s470_s13  ;;  %p474_p9 = scmp.lt.u32.totalorder %s470_s13, %s756_s3 }
  0x18   :  { %p476_p10 = pnand %p474_p9, %p471_p8 }
  0x1a   :  { %479 = shalt.err (!%p476_p10)
}
  0x1b   :  { %s480_s18 = scalar_lea.vmem %s55_s24, 128  ;;  %p485_p12 = scmp.lt.s32.totalorder %s55_s24, %s55_s24 }
  0x1c   :  { %p481_p11 = scmp.ne.s32.totalorder %s55_s24, %s480_s18  ;;  %p486_p13 = scmp.lt.s32.totalorder %s480_s18, %s480_s18 }
  0x1e   :  { %p487_p0 = por %p486_p13, %p485_p12 }
  0x20   :  { %p488_p1 = pnand %p487_p0, %p481_p11 }
  0x22   :  { %491 = shalt.err (!%p488_p1)
}
  0x23   :  { %57 = dma.hbm_to_vmem [thread:$0]  %s756_s3, 128, %s55_s24, [#allocation9]  }
  0x24   :  { %s614_s20 = smov [#allocation2]   ;;  %s492_s25 = scalar_lea.hbm %s753_s0, 1024 }
  0x25   :  { %s21_s21 = sshll.u32 %s614_s20, 4  ;;  %p493_p2 = scmp.ne.s32.totalorder %s753_s0, %s492_s25  ;;  %s22_s21 = int_to_ptr.vmem [resolvable:$true] %s21_s21 }
  0x26   :  { %p496_p3 = scmp.lt.u32.totalorder %s492_s25, %s753_s0 }
  0x28   :  { %p498_p4 = pnand %p496_p3, %p493_p2 }
  0x2a   :  { %501 = shalt.err (!%p498_p4)
}
  0x2b   :  { %s502_s30 = scalar_lea.vmem %s22_s21, 1024  ;;  %p507_p6 = scmp.lt.s32.totalorder %s22_s21, %s22_s21 }
  0x2c   :  { %p503_p5 = scmp.ne.s32.totalorder %s22_s21, %s502_s30  ;;  %p508_p7 = scmp.lt.s32.totalorder %s502_s30, %s502_s30 }
  0x2e   :  { %p509_p8 = por %p508_p7, %p507_p6 }
  0x30   :  { %p510_p9 = pnand %p509_p8, %p503_p5 }
  0x32   :  { %513 = shalt.err (!%p510_p9)
}
  0x33   :  { %s615_s3 = smov 128   ;;  %s616_s24 = smov 8  }
  0x34   :  { %27 = dma.hbm_to_vmem [thread:$0]  %s753_s0, 1024, %s22_s21, [#allocation3], %s615_s3, %s615_s3, %s616_s24  }
  0x35   :  { %s617_s9 = smov [#allocation7]   ;;  %s618_s11 = smov [#allocation10]  }
  0x36   :  { %s44_s10 = sshll.u32 %s617_s9, 4  ;;  %s64_s12 = sshll.u32 %s618_s11, 4  ;;  %s45_s10 = int_to_ptr.vmem [resolvable:$true] %s44_s10  ;;  %s65_s12 = int_to_ptr.vmem [resolvable:$true] %s64_s12 }
  0x37   :  { %s514_s15 = scalar_lea.hbm %s755_s2, 128 }
  0x38   :  { %p515_p10 = scmp.ne.s32.totalorder %s755_s2, %s514_s15  ;;  %p518_p11 = scmp.lt.u32.totalorder %s514_s15, %s755_s2 }
  0x3a   :  { %p520_p12 = pnand %p518_p11, %p515_p10 }
  0x3c   :  { %523 = shalt.err (!%p520_p12)
}
  0x3d   :  { %s524_s0 = scalar_lea.vmem %s45_s10, 128  ;;  %p529_p0 = scmp.lt.s32.totalorder %s45_s10, %s45_s10 }
  0x3e   :  { %p525_p13 = scmp.ne.s32.totalorder %s45_s10, %s524_s0  ;;  %p530_p1 = scmp.lt.s32.totalorder %s524_s0, %s524_s0 }
  0x40   :  { %p531_p2 = por %p530_p1, %p529_p0 }
  0x42   :  { %p532_p3 = pnand %p531_p2, %p525_p13 }
  0x44   :  { %535 = shalt.err (!%p532_p3)
}
  0x45   :  { %47 = dma.hbm_to_vmem [thread:$0]  %s755_s2, 128, %s45_s10, [#allocation6]  }
  0x46   :  { %s536_s23 = scalar_lea.hbm %s757_s4, 128 }
  0x47   :  { %p537_p4 = scmp.ne.s32.totalorder %s757_s4, %s536_s23  ;;  %p540_p5 = scmp.lt.u32.totalorder %s536_s23, %s757_s4 }
  0x49   :  { %p542_p6 = pnand %p540_p5, %p537_p4 }
  0x4b   :  { %545 = shalt.err (!%p542_p6)
}
  0x4c   :  { %s546_s29 = scalar_lea.vmem %s65_s12, 128  ;;  %p551_p8 = scmp.lt.s32.totalorder %s65_s12, %s65_s12 }
  0x4d   :  { %p547_p7 = scmp.ne.s32.totalorder %s65_s12, %s546_s29  ;;  %p552_p9 = scmp.lt.s32.totalorder %s546_s29, %s546_s29 }
  0x4f   :  { %p553_p10 = por %p552_p9, %p551_p8 }
  0x51   :  { %p554_p11 = pnand %p553_p10, %p547_p7 }
  0x53   :  { %557 = shalt.err (!%p554_p11)
}
  0x54   :  { %67 = dma.hbm_to_vmem [thread:$0]  %s757_s4, 128, %s65_s12, [#allocation9]  }
  0x55   :  { %s619_s7 = smov [#allocation11]   ;;  %s558_s11 = scalar_lea.hbm %s758_s5, 256 }
  0x56   :  { %s73_s8 = sshll.u32 %s619_s7, 4  ;;  %p559_p12 = scmp.ne.s32.totalorder %s758_s5, %s558_s11  ;;  %s74_s8 = int_to_ptr.vmem [resolvable:$true] %s73_s8 }
  0x57   :  { %p562_p13 = scmp.lt.u32.totalorder %s558_s11, %s758_s5 }
  0x59   :  { %p564_p0 = pnand %p562_p13, %p559_p12 }
  0x5b   :  { %567 = shalt.err (!%p564_p0)
}
  0x5c   :  { %s568_s17 = scalar_lea.vmem %s74_s8, 256  ;;  %p573_p2 = scmp.lt.s32.totalorder %s74_s8, %s74_s8 }
  0x5d   :  { %p569_p1 = scmp.ne.s32.totalorder %s74_s8, %s568_s17  ;;  %p574_p3 = scmp.lt.s32.totalorder %s568_s17, %s568_s17 }
  0x5f   :  { %p575_p4 = por %p574_p3, %p573_p2 }
  0x61   :  { %p576_p5 = pnand %p575_p4, %p569_p1 }
  0x63   :  { %579 = shalt.err (!%p576_p5)
}
  0x64   :  { %79 = dma.hbm_to_vmem [thread:$0]  %s758_s5, 256, %s74_s8, [#allocation12], %s615_s3, %s615_s3, %s616_s24  }
  0x65   :  { %602 = dma.done.wait [#allocation3], 1024  }
  0x66   :  { %603 = vsyncadd [#allocation3], 4294966272 }
  0x67   :  { %604 = dma.done.wait [#allocation6], 256  }
  0x68   :  { %605 = vsyncadd [#allocation6], 4294967040 }
  0x69   :  { %606 = dma.done.wait [#allocation9], 256  }
  0x6a   :  { %607 = vsyncadd [#allocation9], 4294967040 }
  0x6b   :  { %608 = dma.done.wait [#allocation12], 256  }
  0x6c   :  { %609 = vsyncadd [#allocation12], 4294967040  ;;  %v620_v0 = vmov 0.0|0.0   ;;  %vm621_vm0 = vmmov 0   ;;  %v622_v1 = vmov 0.0   ;;  %v623_v2 = vmov 0  }
  0x6d   :  { %422 = vmatprep.subr.bf16.mxu0 %v620_v0  ;;  %409 = vmatprep.mubr.msk.f32.mxu0 %vm621_vm0, %v622_v1  ;;  %v99_v3 = vld [vmem:[#allocation2] sm:$0xff]  ;;  %v100_v4 = vld [vmem:[#allocation2 + $0x8] sm:$0xff]  ;;  %v101_v5 = vld [vmem:[#allocation2 + $0x10] sm:$0xff]  ;;  %vm113_vm1 = vcmask 523264   ;;  %vm195_vm2 = vcmask 64512   ;;  %s624_s5 = smov [#allocation13]  }
  0x6e   :  { %447 = vset.pattern.permute.xlu0 %v623_v2  ;;  %412 = vmatprep.subr.mxu1 %v622_v1  ;;  %v423_v6 = vpack.c.bf16 %v100_v4, %v99_v3  ;;  %v102_v7 = vld [vmem:[#allocation2 + $0x18] sm:$0xff]  ;;  %v107_v9 = vld [vmem:[#allocation7] sm:$0xff]  ;;  %v103_v10 = vld [vmem:[#allocation2 + $0x20] sm:$0xff]  ;;  %s360_s18 = sshll.u32 %s624_s5, 4  ;;  %s361_s18 = int_to_ptr.vmem [resolvable:$true] %s360_s18 }
  0x6f   :  { %414 = vmatprep.mubr.msk.f32.mxu1 %vm621_vm0, %v622_v1  ;;  %v426_v8 = vpack.c.bf16 %v102_v7, %v101_v5  ;;  %v104_v11 = vld [vmem:[#allocation2 + $0x28] sm:$0xff]  ;;  %110 = vperm.xlu0 %447, %v107_v9   ;;  %v189_v12 = vld [vmem:[#allocation10] sm:$0xff]  ;;  %v105_v14 = vld [vmem:[#allocation2 + $0x30] sm:$0xff]  ;;  %s580_s1 = scalar_lea.vmem %s361_s18, 256  ;;  %p585_p7 = scmp.lt.s32.totalorder %s361_s18, %s361_s18 }
  0x70   :  { %424 = vmatpush3.bf16.msra.mxu0 %v423_v6  ;;  %v429_v13 = vpack.c.bf16 %v104_v11, %v103_v10  ;;  %v106_v15 = vld [vmem:[#allocation2 + $0x38] sm:$0xff]  ;;  %v98_v17 = vld [vmem:[#allocation5] sm:$0xff]  ;;  %v188_v23 = vld [vmem:[#allocation8] sm:$0xff]  ;;  %p581_p6 = scmp.ne.s32.totalorder %s361_s18, %s580_s1  ;;  %p586_p8 = scmp.lt.s32.totalorder %s580_s1, %s580_s1 }
  0x71   :  { %425 = vmatprep.subr.bf16.mxu0 %v620_v0  ;;  %v432_v16 = vpack.c.bf16 %v106_v15, %v105_v14  ;;  %v270_v24 = vld [vmem:[#allocation11] sm:$0xff]  ;;  %v271_v30 = vld [vmem:[#allocation11 + $0x8] sm:$0xff] }
  0x72   :  { %p587_p9 = por %p586_p8, %p585_p7 }
  0x73   :  { %192 = vperm.xlu0 %447, %v189_v12  }
  0x74   :  { %427 = vmatpush3.bf16.msra.mxu0 %v426_v8  ;;  %p588_p10 = pnand %p587_p9, %p581_p6 }
  0x75   :  { %428 = vmatprep.subr.bf16.mxu0 %v620_v0 }
  0x78   :  { %430 = vmatpush3.bf16.msra.mxu0 %v429_v13 }
  0x79   :  { %431 = vmatprep.subr.bf16.mxu0 %v620_v0 }
  0x7c   :  { %433 = vmatpush3.bf16.msra.mxu0 %v432_v16 }
  0x7f   :  { %410 = vmatmul.mubr.msk.f32.vlgmr.msra.gmra.mrb[0].mxu0 %vm113_vm1, %v98_v17 }
  0xee   :  { %v111_v18 = vpop.permute.xlu0 %110 }
  0xf2   :  { %v193_v25 = vpop.permute.xlu0 %192 }
 0x152   :  { %v183_v19 = vpop.f32.mrb[0].mxu0 }
 0x153   :  { %v184_v20 = vadd.f32 %v183_v19, %v111_v18  ;;  %v411_v21 = vpop.f32.mrb[1].mxu0 }
 0x155   :  { %v187_v22 = vmax.f32 %v184_v20, 0.0 }
 0x157   :  { %413 = vmatpush3.msra.mxu1 %v187_v22 }
 0x158   :  { %415 = vmatmul.mubr.msk.f32.vlgmr.msra.gmra.mrb[0].mxu1 %vm195_vm2, %v188_v23 }
 0x159   :  { %419 = vmatprep.mubr.msk.f32.mxu1 %vm195_vm2, %v270_v24 }
 0x22b   :  { %v265_v26 = vpop.f32.mrb[0].mxu1 }
 0x22c   :  { %v266_v27 = vadd.f32 %v265_v26, %v193_v25  ;;  %v416_v28 = vpop.f32.mrb[1].mxu1 }
 0x22e   :  { %v269_v29 = vmax.f32 %v266_v27, 0.0 }
 0x230   :  { %417 = vmatprep.subr.mxu1 %v269_v29 }
 0x231   :  { %418 = vmatpush3.msra.mxu1 %v269_v29 }
 0x232   :  { %420 = vmatmul.mubr.msk.f32.vlgmr.msra.gmra.mrb[2].mxu1 %vm195_vm2, %v271_v30 }
 0x305   :  { %v421_v31 = vpop.f32.mrb[2].mxu1 }
 0x306   :  { %354 = vst [vmem:[#allocation13 + $0x8] sm:$0xff] %v421_v31  ;;  %v344_v32 = vpop.f32.mrb[3].mxu1 }
 0x307   :  { %353 = vst [vmem:[#allocation13] sm:$0xff] %v344_v32 }
 0x308   :  { %591 = shalt.err (!%p588_p10)
}
 0x309   :  { %s592_s20 = scalar_lea.hbm %s759_s6, 256 }
 0x30a   :  { %p593_p11 = scmp.ne.s32.totalorder %s759_s6, %s592_s20  ;;  %p596_p12 = scmp.lt.u32.totalorder %s592_s20, %s759_s6 }
 0x30c   :  { %p598_p13 = pnand %p596_p12, %p593_p11 }
 0x30e   :  { %601 = shalt.err (!%p598_p13)
}
 0x30f   :  { %366 = dma.vmem_to_hbm [thread:$0]  %s361_s18, 256, %s759_s6, [#allocation4], %s615_s3, %s615_s3, %s616_s24  }
 0x310   :  { %610 = dma.done.wait [#allocation4], 256  }
 0x311   :  { %611 = vsyncadd [#allocation4], 4294967040 }
 0x312   :  { %370 = vsyncpa [#allocation3], 1 }
 0x313   :  { %371 = vsyncpa [#allocation6], 1 }
 0x314   :  { %372 = vsyncpa [#allocation9], 1 }
 0x315   :  { %373 = vsyncpa [#allocation12], 1 }
 0x316   :  { %374 = vsyncpa [#allocation4], 1 }

// kernel: ffc_forward_pallas.3
= control target key start
LH: loop header
LB: loop body
LE: loop exit
PB: predicated region body
PF: predicated region fallthrough
CT: control target
= control target key end

     0   :  { %s2571_s0 = inlined_call_operand.hbm [shape: f32[2,16,256], index: 0, kind: input, shape index: {}]   ;;  %s2572_s1 = inlined_call_operand.hbm [shape: f32[2,16,256], index: 1, kind: input, shape index: {}]   ;;  %s2573_s2 = inlined_call_operand.hbm [shape: f32[2,16,256], index: 2, kind: input, shape index: {}]   ;;  %s2574_s3 = inlined_call_operand.hbm [shape: f32[40,16], index: 3, kind: input, shape index: {}]   ;;  %s2575_s4 = inlined_call_operand.hbm [shape: f32[40,16], index: 4, kind: input, shape index: {}]   ;;  %s2576_s5 = inlined_call_operand.hbm [shape: f32[40,1], index: 5, kind: input, shape index: {}]   ;;  %s2577_s6 = inlined_call_operand.hbm [shape: f32[8,8], index: 6, kind: input, shape index: {}]   ;;  %s2578_s7 = inlined_call_operand.hbm [shape: f32[8,1], index: 7, kind: input, shape index: {}]   ;;  %s2579_s8 = inlined_call_operand.hbm [shape: f32[16,8], index: 8, kind: input, shape index: {}]   ;;  %s2580_s9 = inlined_call_operand.hbm [shape: f32[2,16,256], index: 9, kind: output, shape index: {0}]   ;;  %s2581_s10 = inlined_call_operand.hbm [shape: f32[2,16,256], index: 10, kind: output, shape index: {1}]  }
   0x1   :  { %2615 = sst [smem:[#allocation36_spill]] %s2572_s1 }
   0x2   :  { %2616 = sst [smem:[#allocation37_spill]] %s2574_s3 }
   0x3   :  { %2617 = sst [smem:[#allocation38_spill]] %s2576_s5 }
   0x4   :  { %2618 = sst [smem:[#allocation39_spill]] %s2578_s7 }
   0x5   :  { %2619 = sst [smem:[#allocation40_spill]] %s2580_s9 }
   0x6   :  { %2620 = sst [smem:[#allocation41_spill]] %s2581_s10 }
   0x7   :  { %16 = vsyncpa [#allocation3], 0 }
   0x8   :  { %18 = vsyncpa [#allocation3 + $0x1], 0 }
   0x9   :  { %19 = vsyncpa [#allocation6], 0 }
   0xa   :  { %21 = vsyncpa [#allocation6 + $0x1], 0 }
   0xb   :  { %22 = vsyncpa [#allocation9], 0 }
   0xc   :  { %23 = vsyncpa [#allocation12], 0 }
   0xd   :  { %24 = vsyncpa [#allocation15], 0 }
   0xe   :  { %25 = vsyncpa [#allocation4], 0 }
   0xf   :  { %27 = vsyncpa [#allocation4 + $0x1], 0 }
  0x10   :  { %28 = vsyncpa [#allocation19], 0 }
  0x11   :  { %30 = vsyncpa [#allocation19 + $0x1], 0  ;;  %s2016_s13 = smov 0   ;;  %s2018_s14 = smov 0  }
  0x12   :  { %s2020_s15 = smov 0   ;;  %s2022_s16 = smov 0  }
  0x13   :  { %s2024_s17 = smov 0   ;;  %s2026_s18 = smov 0  }
  0x14 LB: > { %2621 = sst [smem:[#allocation27_spill]] %s1920_s13  ;;  %s2047_s19 = sadd.s32 4294967295, %s1940_s18   ;;  %s1940_s18 = sphi %s2026_s18, %s36_s18   ;;  %s1936_s17 = sphi %s2024_s17, %s2674_s17   ;;  %s1932_s16 = sphi %s2022_s16, %s2673_s16   ;;  %s1928_s15 = sphi %s2020_s15, %s2677_s15   ;;  %s1924_s14 = sphi %s2018_s14, %s2676_s14   ;;  %s1920_s13 = sphi %s2016_s13, %s2675_s13  }
  0x15   : > { %2622 = sst [smem:[#allocation28_spill]] %s1932_s16  ;;  %p1323_p0 = scmp.ge.s32.totalorder %s1940_s18, 1 }
  0x16   : > { %2623 = sst [smem:[#allocation29_spill]] %s1936_s17  ;;  %p2586_p1 = scmp.eq.s32.totalorder %s2047_s19, 0 }
  0x17   : > { %2624 = sst [smem:[#allocation30_spill]] %s1940_s18  ;;  %p319_p2 = scmp.lt.s32.totalorder %s1940_s18, 3 }
  0x18   : > { %s1942_s21 = smov [#allocation8]   ;;  %s1943_s24 = smov [#allocation11]  }
  0x19   : > { %p2052_p3 = pnand %p1323_p0, %p319_p2  ;;  %s331_s22 = sshll.u32 %s1942_s21, 4  ;;  %s2056_s22 = int_to_ptr.vmem [resolvable:$true] %s331_s22 }
  0x1a   : > { %s357_s25 = sshll.u32 %s1943_s24, 4  ;;  %s1944_s26 = smov [#allocation14]   ;;  %s2067_s25 = int_to_ptr.vmem [resolvable:$true] %s357_s25 }
  0x1b   : > { %s2625_s20 = scalar_select %p2052_p3, 1, 0 }
  0x1c   : > { %p1438_p4 = pneg %p2052_p3  ;;  %s2069_s27 = sshll.u32 %s1944_s26, 4  ;;  %s383_s27 = int_to_ptr.vmem [resolvable:$true] %s2069_s27 }
  0x1d   : > { %2626 = sst [smem:[#allocation31_spill]] %s2625_s20  ;;  %s2628_s3 = sld [smem:[#allocation37_spill]] }
  0x1e   : > { %p2063_p6 = pnand %p1438_p4, %p2586_p1 }
  0x20   : > { %s2627_s23 = scalar_select %p2063_p6, 1, 0 }
  0x21   : > { %p2079_p8 = pneg %p2063_p6 }
  0x23   : > { %s1552_s30 = scalar_lea.hbm %s2628_s3, 640 }
  0x24   : > { %p1553_p7 = scmp.ne.s32.totalorder %s2628_s3, %s1552_s30  ;;  %p1559_p11 = scmp.lt.u32.totalorder %s1552_s30, %s2628_s3 }
  0x25   : > { %s2629_s21 = scalar_select %p2079_p8, 1, 0 }
  0x26   : > { %p1555_p9 = pnand %p2079_p8, %p1553_p7 }
  0x28   : > { %p1556_p10 = pneg %p1555_p9 }
  0x2a   : > { %p1561_p12 = pnand %p1559_p11, %p1556_p10 }
  0x2c   : > { %1564 = shalt.err (!%p1561_p12)
}
  0x2d   : > { %s1565_s28 = scalar_lea.vmem %s2056_s22, 640  ;;  %p1573_p4 = scmp.lt.s32.totalorder %s2056_s22, %s2056_s22 }
  0x2e   : > { %p1566_p13 = scmp.ne.s32.totalorder %s2056_s22, %s1565_s28  ;;  %p1574_p5 = scmp.lt.s32.totalorder %s1565_s28, %s1565_s28 }
  0x30   : > { %p1568_p0 = pnand %p1566_p13, %p2079_p8  ;;  %p1575_p7 = por %p1574_p5, %p1573_p4 }
  0x32   : > { %p1569_p2 = pneg %p1568_p0 }
  0x34   : > { %p1576_p9 = pnand %p1575_p7, %p1569_p2 }
  0x36   : > { %1579 = shalt.err (!%p1576_p9)
}
  0x37   : > { %s2588_s29 = smov 128   ;;  %s2590_s30 = smov 8  }
  0x38   : > { %1441 = dma.hbm_to_vmem [thread:$0]  (!%p2063_p6), %s2628_s3, 640, %s2056_s22, [#allocation9], %s2588_s29, %s2588_s29, %s2590_s30  }
  0x39   : > { %s2630_s5 = sld [smem:[#allocation38_spill]] }
  0x3f   : > { %s1580_s28 = scalar_lea.hbm %s2630_s5, 640 }
  0x40   : > { %p1581_p5 = scmp.ne.s32.totalorder %s2630_s5, %s1580_s28  ;;  %p1587_p12 = scmp.lt.u32.totalorder %s1580_s28, %s2630_s5 }
  0x42   : > { %p1583_p10 = pnand %p1581_p5, %p2079_p8 }
  0x44   : > { %p1584_p11 = pneg %p1583_p10 }
  0x46   : > { %p1589_p13 = pnand %p1587_p12, %p1584_p11 }
  0x48   : > { %1592 = shalt.err (!%p1589_p13)
}
  0x49   : > { %s1593_s22 = scalar_lea.vmem %s2067_s25, 640  ;;  %p1601_p7 = scmp.lt.s32.totalorder %s2067_s25, %s2067_s25 }
  0x4a   : > { %p1594_p0 = scmp.ne.s32.totalorder %s2067_s25, %s1593_s22  ;;  %p1602_p9 = scmp.lt.s32.totalorder %s1593_s22, %s1593_s22 }
  0x4c   : > { %p1596_p2 = pnand %p1594_p0, %p2079_p8  ;;  %p1603_p5 = por %p1602_p9, %p1601_p7 }
  0x4e   : > { %p1597_p4 = pneg %p1596_p2 }
  0x50   : > { %p1604_p10 = pnand %p1603_p5, %p1597_p4 }
  0x52   : > { %1607 = shalt.err (!%p1604_p10)
}
  0x53   : > { %1447 = dma.hbm_to_vmem [thread:$0]  (!%p2063_p6), %s2630_s5, 640, %s2067_s25, [#allocation12], %s2588_s29, %s2588_s29, %s2590_s30  }
  0x54   : > { %s2631_s7 = sld [smem:[#allocation39_spill]] }
  0x5a   : > { %s1608_s11 = scalar_lea.hbm %s2631_s7, 128 }
  0x5b   : > { %p1609_p11 = scmp.ne.s32.totalorder %s2631_s7, %s1608_s11  ;;  %p1615_p0 = scmp.lt.u32.totalorder %s1608_s11, %s2631_s7 }
  0x5d   : > { %p1611_p12 = pnand %p1609_p11, %p2079_p8 }
  0x5f   : > { %p1612_p13 = pneg %p1611_p12 }
  0x61   : > { %p1617_p2 = pnand %p1615_p0, %p1612_p13 }
  0x63   : > { %1620 = shalt.err (!%p1617_p2)
}
  0x64   : > { %s1621_s22 = scalar_lea.vmem %s383_s27, 128  ;;  %p1629_p5 = scmp.lt.s32.totalorder %s383_s27, %s383_s27 }
  0x65   : > { %p1622_p4 = scmp.ne.s32.totalorder %s383_s27, %s1621_s22  ;;  %p1630_p10 = scmp.lt.s32.totalorder %s1621_s22, %s1621_s22 }
  0x67   : > { %p1624_p7 = pnand %p1622_p4, %p2079_p8  ;;  %p1631_p1 = por %p1630_p10, %p1629_p5 }
  0x69   : > { %p1625_p9 = pneg %p1624_p7 }
  0x6b   : > { %p1632_p3 = pnand %p1631_p1, %p1625_p9 }
  0x6d   : > { %1635 = shalt.err (!%p1632_p3)
}
  0x6e   : > { %1453 = dma.hbm_to_vmem [thread:$0]  (!%p2063_p6), %s2631_s7, 128, %s383_s27, [#allocation15]  }
  0x6f   : > { %s1322_s10 = sadd.s32 4294967294, %s1940_s18   ;;  %s48_s16 = sadd.s32 1, %s1936_s17 }
  0x70   : > { %s57_s20 = sadd.s32 1, %s1928_s15  ;;  %p50_p1 = scmp.ge.s32.totalorder %s48_s16, 2 }
  0x71   : > { %p64_p3 = scmp.ne.s32.totalorder %s1928_s15, %s1924_s14  ;;  %p65_p11 = scmp.eq.s32.totalorder %s1940_s18, 0 }
  0x72   : > { %p70_p12 = scmp.ne.s32.totalorder %s1924_s14, %s1920_s13  ;;  %s2679_s16 = smov (%p50_p1, %s48_s16), 0 }
  0x73   : > { %2632 = sst [smem:[#allocation32_spill]] %s2679_s16  ;;  %p2158_p13 = por %p65_p11, %p64_p3 }
  0x74   : > { %p2634_p0 = scmp.eq.s32.totalorder %s2047_s19, 0  ;;  %s52_s12 = ssub.s32 %s1936_s17, %s2679_s16 }
  0x75   : > { %p278_p4 = scmp.eq.s32.totalorder %s2047_s19, 1  ;;  %p55_p7 = scmp.eq.s32.totalorder %s52_s12, 0 }
  0x76   : > { %p2164_p2 = por %p2634_p0, %p70_p12  ;;  %p284_p9 = scmp.eq.s32.totalorder %s1322_s10, 1 }
  0x77   : > { %p2171_p5 = por %p278_p4, %p64_p3  ;;  %p1480_p10 = scmp.lt.s32.totalorder %s1940_s18, 2 }
  0x78   : > { %s2635_s27 = scalar_select %p2164_p2, 1, 0 }
  0x79   : > { %s2636_s24 = scalar_select %p2171_p5, 1, 0 }
  0x7a   : > { %s2177_s26 = scalar_select %p55_p7, %s1928_s15, %s57_s20  }
  0x7b   : > { %2637 = sst [smem:[#allocation33_spill]] %s2636_s24  ;;  %p2179_p1 = por %p284_p9, %p70_p12 }
  0x7c   : > { %2638 = sst [smem:[#allocation34_spill]] %s2177_s26  ;;  %s2592_s22 = sand.u32 1, %s1928_s15  }
  0x7d   : > { %s2639_s28 = scalar_select %p2179_p1, 1, 0 }
  0x7e   : > { %s2186_s25 = sshll.u32 %s2592_s22, 5  ;;  %s2189_s9 = sshll.u32 %s1936_s17, 9 }
  0x7f   : > { %2640 = sst [smem:[#allocation35_spill]] %s2639_s28  ;;  %p2193_p3 = pnand %p1480_p10, %p2158_p13 }
  0x80   : > { %s429_s20 = sand.u32 1, %s1940_s18   ;;  %s2642_s1 = sld [smem:[#allocation36_spill]] }
  0x81   : > { %s2641_s10 = scalar_select %p2193_p3, 1, 0 }
  0x82   : > { %s433_s22 = scalar_lea.vmem [#allocation5], %s2186_s25  ;;  %s1947_s11 = smov [#allocation10]  }
  0x83   : > { %s442_s3 = sshll.u32 %s433_s22, 4  ;;  %s2207_s5 = sshll.u32 %s1947_s11, 4  ;;  %s2205_s3 = int_to_ptr.vmem [resolvable:$true] %s442_s3  ;;  %s345_s5 = int_to_ptr.vmem [resolvable:$true] %s2207_s5 }
  0x84   : > { %s2209_s7 = scalar_lea.sflag [#allocation6], %s429_s20  ;;  %p2215_p12 = pneg %p2193_p3 }
  0x86   : > { %s2202_s30 = scalar_lea.hbm %s2642_s1, %s2189_s9  ;;  %s1641_s17 = scalar_lea.hbm %s2642_s1, 1024 }
  0x87   : > { %s1636_s16 = scalar_lea.hbm %s2202_s30, 512  ;;  %p1642_p4 = scmp.lt.u32.totalorder %s2202_s30, %s2642_s1 }
  0x88   : > { %p1637_p11 = scmp.ne.s32.totalorder %s2202_s30, %s1636_s16  ;;  %p1643_p7 = scmp.lt.u32.totalorder %s1641_s17, %s1636_s16 }
  0x89   : > { %s2643_s29 = scalar_select %p2215_p12, 1, 0 }
  0x8a   : > { %p1639_p13 = pnand %p2215_p12, %p1637_p11  ;;  %p1644_p9 = por %p1643_p7, %p1642_p4 }
  0x8b   : > { %p1645_p10 = scmp.lt.u32.totalorder %s1636_s16, %s2202_s30 }
  0x8c   : > { %p1640_p0 = pneg %p1639_p13 }
  0x8d   : > { %p1646_p1 = por %p1645_p10, %p1644_p9 }
  0x8f   : > { %p1647_p5 = pnand %p1646_p1, %p1640_p0 }
  0x91   : > { %1650 = shalt.err (!%p1647_p5)
}
  0x92   : > { %s1651_s20 = scalar_lea.vmem %s2205_s3, 512  ;;  %s1948_s12 = smov [#allocation5]  }
  0x93   : > { %p1652_p11 = scmp.ne.s32.totalorder %s2205_s3, %s1651_s20  ;;  %s1656_s22 = sshll.u32 %s1948_s12, 4  ;;  %s1657_s22 = int_to_ptr.vmem [resolvable:$false] %s1656_s22 }
  0x94   : > { %s1658_s26 = scalar_lea.vmem %s1657_s22, 1024  ;;  %p1659_p6 = scmp.lt.s32.totalorder %s2205_s3, %s1657_s22 }
  0x95   : > { %p1654_p13 = pnand %p1652_p11, %p2215_p12  ;;  %p1660_p8 = scmp.lt.s32.totalorder %s1658_s26, %s1651_s20 }
  0x97   : > { %p1655_p2 = pneg %p1654_p13  ;;  %p1661_p4 = por %p1660_p8, %p1659_p6 }
  0x99   : > { %p1662_p7 = pnand %p1661_p4, %p1655_p2 }
  0x9b   : > { %1665 = shalt.err (!%p1662_p7)
}
  0x9c   : > { %s2606_s17 = smov 256   ;;  %s2608_s16 = smov 16  }
  0x9d   : > { %1463 = dma.hbm_to_vmem [thread:$0]  (!%p2193_p3), %s2202_s30, 512, %s2205_s3, %s2209_s7, %s2606_s17, %s2606_s17, %s2608_s16  }
  0x9e   : > { %s1666_s20 = scalar_lea.hbm %s2575_s4, 640  ;;  %p2644_p8 = scmp.ne.s32.totalorder %s2629_s21, 0 }
  0x9f   : > { %p1667_p6 = scmp.ne.s32.totalorder %s2575_s4, %s1666_s20  ;;  %p1673_p1 = scmp.lt.u32.totalorder %s1666_s20, %s2575_s4 }
  0xa1   : > { %p1669_p2 = pnand %p1667_p6, %p2644_p8 }
  0xa3   : > { %p1670_p5 = pneg %p1669_p2 }
  0xa5   : > { %p1675_p0 = pnand %p1673_p1, %p1670_p5 }
  0xa7   : > { %1678 = shalt.err (!%p1675_p0)
}
  0xa8   : > { %s1679_s28 = scalar_lea.vmem %s345_s5, 640  ;;  %p1687_p13 = scmp.lt.s32.totalorder %s345_s5, %s345_s5 }
  0xa9   : > { %p1680_p9 = scmp.ne.s32.totalorder %s345_s5, %s1679_s28  ;;  %p1688_p4 = scmp.lt.s32.totalorder %s1679_s28, %s1679_s28 }
  0xab   : > { %p1682_p10 = pnand %p1680_p9, %p2644_p8  ;;  %p1689_p7 = por %p1688_p4, %p1687_p13 }
  0xad   : > { %p1683_p11 = pneg %p1682_p10 }
  0xaf   : > { %p1690_p3 = pnand %p1689_p7, %p1683_p11 }
  0xb1   : > { %1693 = shalt.err (!%p1690_p3)
}
  0xb2   : > { %p2645_p6 = scmp.ne.s32.totalorder %s2627_s23, 0  ;;  %s2646_s3 = smov 8  }
  0xb3   : > { %s2647_s30 = smov 128   ;;  %s1951_s11 = smov [#allocation13]  }
  0xb4   : > { %1444 = dma.hbm_to_vmem [thread:$0]  (!%p2645_p6), %s2575_s4, 640, %s345_s5, [#allocation9], %s2647_s30, %s2647_s30, %s2646_s3  }
  0xb5   : > { %s371_s12 = sshll.u32 %s1951_s11, 4  ;;  %s1952_s20 = smov [#allocation16]   ;;  %s372_s12 = int_to_ptr.vmem [resolvable:$true] %s371_s12 }
  0xb6   : > { %s392_s22 = sshll.u32 %s1952_s20, 4  ;;  %s1694_s17 = scalar_lea.hbm %s2577_s6, 128  ;;  %s393_s22 = int_to_ptr.vmem [resolvable:$true] %s392_s22 }
  0xb7   : > { %p1695_p3 = scmp.ne.s32.totalorder %s2577_s6, %s1694_s17  ;;  %p1701_p1 = scmp.lt.u32.totalorder %s1694_s17, %s2577_s6 }
  0xb9   : > { %p1697_p2 = pnand %p1695_p3, %p2644_p8 }
  0xbb   : > { %p1698_p5 = pneg %p1697_p2 }
  0xbd   : > { %p1703_p0 = pnand %p1701_p1, %p1698_p5 }
  0xbf   : > { %1706 = shalt.err (!%p1703_p0)
}
  0xc0   : > { %s1707_s5 = scalar_lea.vmem %s372_s12, 128  ;;  %p1715_p13 = scmp.lt.s32.totalorder %s372_s12, %s372_s12 }
  0xc1   : > { %p1708_p9 = scmp.ne.s32.totalorder %s372_s12, %s1707_s5  ;;  %p1716_p4 = scmp.lt.s32.totalorder %s1707_s5, %s1707_s5 }
  0xc3   : > { %p1710_p10 = pnand %p1708_p9, %p2644_p8  ;;  %p1717_p7 = por %p1716_p4, %p1715_p13 }
  0xc5   : > { %p1711_p11 = pneg %p1710_p10 }
  0xc7   : > { %p1718_p12 = pnand %p1717_p7, %p1711_p11 }
  0xc9   : > { %1721 = shalt.err (!%p1718_p12)
}
  0xca   : > { %1450 = dma.hbm_to_vmem [thread:$0]  (!%p2645_p6), %s2577_s6, 128, %s372_s12, [#allocation12]  }
  0xcb   : > { %s1722_s18 = scalar_lea.hbm %s2579_s8, 256 }
  0xcc   : > { %p1723_p3 = scmp.ne.s32.totalorder %s2579_s8, %s1722_s18  ;;  %p1729_p12 = scmp.lt.u32.totalorder %s1722_s18, %s2579_s8 }
  0xce   : > { %p1725_p2 = pnand %p1723_p3, %p2644_p8 }
  0xd0   : > { %p1726_p5 = pneg %p1725_p2 }
  0xd2   : > { %p1731_p1 = pnand %p1729_p12, %p1726_p5 }
  0xd4   : > { %1734 = shalt.err (!%p1731_p1)
}
  0xd5   : > { %s1735_s1 = scalar_lea.vmem %s393_s22, 256  ;;  %p1743_p11 = scmp.lt.s32.totalorder %s393_s22, %s393_s22 }
  0xd6   : > { %p1736_p0 = scmp.ne.s32.totalorder %s393_s22, %s1735_s1  ;;  %p1744_p13 = scmp.lt.s32.totalorder %s1735_s1, %s1735_s1 }
  0xd8   : > { %p1738_p9 = pnand %p1736_p0, %p2644_p8  ;;  %p1745_p4 = por %p1744_p13, %p1743_p11 }
  0xda   : > { %p1739_p10 = pneg %p1738_p9 }
  0xdc   : > { %p1746_p7 = pnand %p1745_p4, %p1739_p10 }
  0xde   : > { %1749 = shalt.err (!%p1746_p7)
}
  0xdf   : > { %1456 = dma.hbm_to_vmem [thread:$0]  (!%p2645_p6), %s2579_s8, 256, %s393_s22, [#allocation15], %s2647_s30, %s2647_s30, %s2646_s3  }
  0xe0   : > { %s2307_s16 = scalar_lea.hbm %s2571_s0, %s2189_s9  ;;  %s410_s23 = scalar_lea.vmem [#allocation2], %s2186_s25 }
  0xe1   : > { %s419_s24 = sshll.u32 %s410_s23, 4  ;;  %s2316_s11 = scalar_lea.hbm %s2573_s2, %s2189_s9  ;;  %s2310_s24 = int_to_ptr.vmem [resolvable:$true] %s419_s24 }
  0xe2   : > { %s2648_s20 = sand.u32 1, %s1928_s15   ;;  %s1750_s30 = scalar_lea.hbm %s2307_s16, 512 }
  0xe3   : > { %s2320_s3 = scalar_lea.sflag [#allocation3], %s2648_s20  ;;  %p1751_p8 = scmp.ne.s32.totalorder %s2307_s16, %s1750_s30 }
  0xe4   : > { %p2649_p6 = scmp.ne.s32.totalorder %s2643_s29, 0  ;;  %s1755_s28 = scalar_lea.hbm %s2571_s0, 1024 }
  0xe5   : > { %p1756_p5 = scmp.lt.u32.totalorder %s2307_s16, %s2571_s0  ;;  %p1757_p12 = scmp.lt.u32.totalorder %s1755_s28, %s1750_s30 }
  0xe6   : > { %p1753_p3 = pnand %p1751_p8, %p2649_p6  ;;  %p1759_p0 = scmp.lt.u32.totalorder %s1750_s30, %s2307_s16 }
  0xe7   : > { %p1758_p1 = por %p1757_p12, %p1756_p5 }
  0xe8   : > { %p1754_p2 = pneg %p1753_p3 }
  0xe9   : > { %p1760_p9 = por %p1759_p0, %p1758_p1 }
  0xeb   : > { %p1761_p10 = pnand %p1760_p9, %p1754_p2 }
  0xed   : > { %1764 = shalt.err (!%p1761_p10)
}
  0xee   : > { %s1765_s9 = scalar_lea.vmem %s2310_s24, 512  ;;  %s1953_s5 = smov [#allocation2]  }
  0xef   : > { %p1766_p11 = scmp.ne.s32.totalorder %s2310_s24, %s1765_s9  ;;  %s1770_s21 = sshll.u32 %s1953_s5, 4  ;;  %s1771_s21 = int_to_ptr.vmem [resolvable:$false] %s1770_s21 }
  0xf0   : > { %s1772_s13 = scalar_lea.vmem %s1771_s21, 1024  ;;  %p1773_p7 = scmp.lt.s32.totalorder %s2310_s24, %s1771_s21 }
  0xf1   : > { %p1768_p13 = pnand %p1766_p11, %p2649_p6  ;;  %p1774_p8 = scmp.lt.s32.totalorder %s1772_s13, %s1765_s9 }
  0xf3   : > { %p1769_p4 = pneg %p1768_p13  ;;  %p1775_p3 = por %p1774_p8, %p1773_p7 }
  0xf5   : > { %p1776_p5 = pnand %p1775_p3, %p1769_p4 }
  0xf7   : > { %1779 = shalt.err (!%p1776_p5)
}
  0xf8   : > { %p2650_p2 = scmp.ne.s32.totalorder %s2641_s10, 0  ;;  %s2651_s23 = smov 16  }
  0xf9   : > { %s2652_s17 = smov 256   ;;  %s456_s18 = scalar_lea.vmem [#allocation7], %s2186_s25 }
  0xfa   : > { %1460 = dma.hbm_to_vmem [thread:$0]  (!%p2650_p2), %s2307_s16, 512, %s2310_s24, %s2320_s3, %s2652_s17, %s2652_s17, %s2651_s23  }
  0xfb   : > { %s465_s20 = sshll.u32 %s456_s18, 4  ;;  %s1780_s30 = scalar_lea.hbm %s2316_s11, 512  ;;  %s2348_s20 = int_to_ptr.vmem [resolvable:$true] %s465_s20 }
  0xfc   : > { %p1781_p12 = scmp.ne.s32.totalorder %s2316_s11, %s1780_s30  ;;  %s1785_s28 = scalar_lea.hbm %s2573_s2, 1024 }
  0xfd   : > { %p1786_p9 = scmp.lt.u32.totalorder %s2316_s11, %s2573_s2  ;;  %p1787_p10 = scmp.lt.u32.totalorder %s1785_s28, %s1780_s30 }
  0xfe   : > { %p1783_p1 = pnand %p1781_p12, %p2649_p6  ;;  %p1789_p13 = scmp.lt.u32.totalorder %s1780_s30, %s2316_s11 }
  0xff   : > { %p1788_p11 = por %p1787_p10, %p1786_p9 }
 0x100   : > { %p1784_p0 = pneg %p1783_p1 }
 0x101   : > { %p1790_p4 = por %p1789_p13, %p1788_p11 }
 0x103   : > { %p1791_p7 = pnand %p1790_p4, %p1784_p0 }
 0x105   : > { %1794 = shalt.err (!%p1791_p7)
}
 0x106   : > { %s1795_s25 = scalar_lea.vmem %s2348_s20, 512  ;;  %s1954_s16 = smov [#allocation7]  }
 0x107   : > { %p1796_p8 = scmp.ne.s32.totalorder %s2348_s20, %s1795_s25  ;;  %s1800_s24 = sshll.u32 %s1954_s16, 4  ;;  %s1801_s24 = int_to_ptr.vmem [resolvable:$false] %s1800_s24 }
 0x108   : > { %s1802_s3 = scalar_lea.vmem %s1801_s24, 1024  ;;  %p1803_p12 = scmp.lt.s32.totalorder %s2348_s20, %s1801_s24 }
 0x109   : > { %p1798_p3 = pnand %p1796_p8, %p2649_p6  ;;  %p1804_p1 = scmp.lt.s32.totalorder %s1802_s3, %s1795_s25 }
 0x10b   : > { %p1799_p5 = pneg %p1798_p3  ;;  %p1805_p9 = por %p1804_p1, %p1803_p12 }
 0x10d   : > { %p1806_p10 = pnand %p1805_p9, %p1799_p5 }
 0x10f   : > { %1809 = shalt.err (!%p1806_p10)
}
 0x110   : > { %1466 = dma.hbm_to_vmem [thread:$0]  (!%p2650_p2), %s2316_s11, 512, %s2348_s20, %s2209_s7, %s2652_s17, %s2652_s17, %s2651_s23  }
 0x111   : > { %s2653_s29 = sld [smem:[#allocation31_spill]] }
 0x117   : > { %p2654_p6 = scmp.ne.s32.totalorder %s2653_s29, 0 }
 0x118   : > { %s2378_s9 = sand.u32 (!%p2654_p6), 1, %s1924_s14   ;;  %p2655_p0 = scmp.ne.s32.totalorder (!%p2654_p6), %s2635_s27, 0 }
 0x119   : > { %477 = sbr.rel (%p2654_p6) target bundleno = 1003 (0x3eb), region = 56  ;;  %s2381_s5 = sshll.u32 (!%p2654_p6), %s2378_s9, 5 }
 0x11a   : > { %s480_s10 = scalar_lea.sflag (!%p2654_p6), [#allocation3], %s2378_s9  ;;  %s2385_s21 = scalar_lea.vmem (!%p2654_p6), [#allocation2], %s2381_s5 }
 0x120   : > { %1891 = dma.done.wait (%p2655_p0), %s480_s10, 512  }
 0x121   : > { %1893 = vsyncadd (%p2655_p0), %s480_s10, 4294966784  ;;  %s488_s7 = sand.u32 1, %s2047_s19   ;;  %s492_s13 = scalar_lea.vmem [#allocation5], %s2381_s5 }
 0x122   : > { %s489_s11 = scalar_lea.sflag [#allocation6], %s488_s7 }
 0x123   : > { %1895 = dma.done.wait (%p2655_p0), %s489_s11, 1024  }
 0x124   : > { %1897 = vsyncadd (%p2655_p0), %s489_s11, 4294966272  ;;  %s2398_s23 = scalar_lea.vmem [#allocation7], %s2381_s5  ;;  %p2656_p2 = scmp.eq.s32.totalorder %s2047_s19, 0 }
 0x126   : > { %1899 = dma.done.wait (%p2656_p2), [#allocation9], 1280   ;;  %p2657_p11 = pmov %p2656_p2 }
 0x127   : > { %p2658_p13 = pmov %p2656_p2 }
 0x128   : > { %1901 = vsyncadd (%p2657_p11), [#allocation9], 4294966016 }
 0x129   : > { %1903 = dma.done.wait (%p2658_p13), [#allocation12], 768   ;;  %p2659_p4 = pmov %p2656_p2 }
 0x12a   : > { %p2660_p7 = pmov %p2656_p2 }
 0x12b   : > { %1905 = vsyncadd (%p2659_p4), [#allocation12], 4294966528 }
 0x12c   : > { %1907 = dma.done.wait (%p2660_p7), [#allocation15], 384   ;;  %p2661_p8 = pmov %p2656_p2 }
 0x12d   : > { %v1955_v0 = vmov 0.0   ;;  %v1956_v1 = vmov 0   ;;  %v587_v2 = vld [vmem:[%s492_s13 + $0x8] sm:$0xff]  ;;  %v589_v3 = vld [vmem:[%s492_s13 + $0x18] sm:$0xff]  ;;  %v586_v7 = vld [vmem:[%s492_s13] sm:$0xff]  ;;  %vm600_vm0 = vcmask 130048  }
 0x12e   : > { %1909 = vsyncadd (%p2661_p8), [#allocation15], 4294966912  ;;  %680 = vmatprep.mubr.f32.mxu1 %v1955_v0  ;;  %790 = vmatprep.mubr.f32.mxu0 %v1955_v0  ;;  %v583_v4 = vld [vmem:[%s2385_s21 + $0x8] sm:$0xff]  ;;  %v1378_v5 = vpack.c.bf16 %v589_v3, %v587_v2  ;;  %v585_v6 = vld [vmem:[%s2385_s21 + $0x18] sm:$0xff]  ;;  %s2443_s19 = scalar_lea.vmem [#allocation17], %s2381_s5  ;;  %vm874_vm1 = vcmask 64512  }
 0x12f   : > { %1550 = vset.pattern.permute.xlu0 %v1956_v1  ;;  %1551 = vset.pattern.permute.xlu1 %v1956_v1  ;;  %v588_v8 = vld [vmem:[%s492_s13 + $0x10] sm:$0xff]  ;;  %v1382_v9 = vpack.c.bf16 %v585_v6, %v583_v4  ;;  %v582_v11 = vld [vmem:[%s2385_s21] sm:$0xff]  ;;  %v595_v14 = vld [vmem:[#allocation10] sm:$0xff]  ;;  %s2662_s27 = sld [smem:[#allocation28_spill]]  ;;  %s2663_s17 = sld [smem:[#allocation33_spill]] }
 0x130   : > { %v1380_v10 = vpack.c.bf16 %v588_v8, %v586_v7  ;;  %v584_v12 = vld [vmem:[%s2385_s21 + $0x10] sm:$0xff]  ;;  %1379 = vmatprep.subr.bf16.mxu1 %v1378_v5  ;;  %v590_v15 = vld [vmem:[#allocation8] sm:$0xff]  ;;  %v591_v20 = vld [vmem:[#allocation8 + $0x8] sm:$0xff]  ;;  %s1075_s18 = sshll.u32 %s2443_s19, 4  ;;  %s2664_s26 = sld [smem:[#allocation40_spill]]  ;;  %s2462_s18 = int_to_ptr.vmem [resolvable:$true] %s1075_s18 }
 0x131   : > { %v1384_v13 = vpack.c.bf16 %v584_v12, %v582_v11  ;;  %1383 = vmatprep.subr.bf16.mxu0 %v1382_v9  ;;  %v825_v16 = vld [vmem:[#allocation11 + $0x20] sm:$0xff]  ;;  %v823_v17 = vld [vmem:[#allocation11 + $0x10] sm:$0xff]  ;;  %v824_v21 = vld [vmem:[#allocation11 + $0x18] sm:$0xff]  ;;  %s1055_s1 = scalar_lea.sflag [#allocation4], %s2378_s9  ;;  %s1810_s12 = scalar_lea.vmem %s2462_s18, 512 }
 0x132   : > { %1381 = vmatpush1.bf16.msra.mxu1 %v1380_v10  ;;  %848 = vperm.xlu0 %1550, %v825_v16   ;;  %v596_v18 = vld [vmem:[#allocation10 + $0x8] sm:$0xff]  ;;  %v868_v19 = vld [vmem:[#allocation14] sm:$0xff]  ;;  %v597_v22 = vld [vmem:[#allocation10 + $0x10] sm:$0xff]  ;;  %p1811_p3 = scmp.ne.s32.totalorder %s2462_s18, %s1810_s12  ;;  %s1957_s25 = smov [#allocation17]  }
 0x133   : > { %1385 = vmatpush1.bf16.msra.mxu0 %v1384_v13  ;;  %838 = vperm.xlu1 %1551, %v823_v17   ;;  %v821_v23 = vld [vmem:[#allocation11] sm:$0xff]  ;;  %v822_v25 = vld [vmem:[#allocation11 + $0x8] sm:$0xff]  ;;  %v598_v26 = vld [vmem:[#allocation10 + $0x18] sm:$0xff]  ;;  %s1814_s16 = sshll.u32 %s1957_s25, 4  ;;  %s1815_s16 = int_to_ptr.vmem [resolvable:$false] %s1814_s16 }
 0x134   : > { %v592_v24 = vld [vmem:[#allocation8 + $0x10] sm:$0xff]  ;;  %v593_v27 = vld [vmem:[#allocation8 + $0x18] sm:$0xff]  ;;  %v599_v28 = vld [vmem:[#allocation10 + $0x20] sm:$0xff]  ;;  %s1816_s24 = scalar_lea.vmem %s1815_s16, 1024  ;;  %p1817_p9 = scmp.lt.s32.totalorder %s2462_s18, %s1815_s16 }
 0x135   : > { %1352 = vmatmul.mubr.msk.f32.vlgmr.msra.gmra.mrb[0].mxu1 %vm600_vm0, %v595_v14  ;;  %v594_v29 = vld [vmem:[#allocation8 + $0x20] sm:$0xff]  ;;  %v867_v3 = vld [vmem:[#allocation13] sm:$0xff]  ;;  %v951_v12 = vld [vmem:[#allocation16] sm:$0xff]  ;;  %s1376_s20 = sshll.u32 %s2662_s27, 9  ;;  %p2665_p5 = scmp.ne.s32.totalorder %s2663_s17, 0 }
 0x136   : > { %1357 = vmatmul.mubr.msk.f32.vlgmr.msra.gmra.mrb[0].mxu0 %vm600_vm0, %v590_v15  ;;  %686 = vmatprep.mubr.f32.mxu1 %v1955_v0  ;;  %v952_v13 = vld [vmem:[#allocation16 + $0x8] sm:$0xff]  ;;  %s2470_s28 = scalar_lea.hbm %s2664_s26, %s1376_s20  ;;  %p1818_p10 = scmp.lt.s32.totalorder %s1816_s24, %s1810_s12 }
 0x137   : > { %796 = vmatprep.mubr.f32.mxu0 %v1955_v0  ;;  %871 = vperm.xlu0 %1550, %v868_v19   ;;  %p1812_p12 = pnand %p1811_p3, %p2665_p5 }
 0x138   : > { %843 = vperm.xlu1 %1551, %v824_v21   ;;  %p1819_p6 = por %p1818_p10, %p1817_p9 }
 0x139   : > { %1353 = vmatmul.mubr.msk.f32.gmra.mrb[2].mxu1 %vm600_vm0, %v596_v18  ;;  %p1813_p1 = pneg %p1812_p12 }
 0x13a   : > { %1358 = vmatmul.mubr.msk.f32.gmra.mrb[2].mxu0 %vm600_vm0, %v591_v20  ;;  %692 = vmatprep.mubr.f32.mxu1 %v1955_v0 }
 0x13b   : > { %802 = vmatprep.mubr.f32.mxu0 %v1955_v0  ;;  %828 = vperm.xlu0 %1550, %v821_v23   ;;  %p1820_p0 = pnand %p1819_p6, %p1813_p1 }
 0x13c   : > { %833 = vperm.xlu1 %1551, %v822_v25  }
 0x13d   : > { %1354 = vmatmul.mubr.msk.f32.gmra.mrb[4].mxu1 %vm600_vm0, %v597_v22 }
 0x13e   : > { %1359 = vmatmul.mubr.msk.f32.gmra.mrb[4].mxu0 %vm600_vm0, %v592_v24  ;;  %698 = vmatprep.mubr.f32.mxu1 %v1955_v0 }
 0x13f   : > { %808 = vmatprep.mubr.f32.mxu0 %v1955_v0 }
 0x141   : > { %1355 = vmatmul.mubr.msk.f32.gmra.mrb[6].mxu1 %vm600_vm0, %v598_v26 }
 0x142   : > { %1360 = vmatmul.mubr.msk.f32.gmra.mrb[6].mxu0 %vm600_vm0, %v593_v27  ;;  %704 = vmatprep.mubr.f32.mxu1 %v1955_v0 }
 0x143   : > { %814 = vmatprep.mubr.f32.mxu0 %v1955_v0 }
 0x145   : > { %1356 = vmatmul.mubr.msk.f32.gmra.mrb[8].mxu1 %vm600_vm0, %v599_v28 }
 0x146   : > { %1361 = vmatmul.mubr.msk.f32.gmra.mrb[8].mxu0 %vm600_vm0, %v594_v29  ;;  %942 = vmatprep.mubr.f32.mxu1 %v1955_v0 }
 0x147   : > { %1025 = vmatprep.mubr.f32.mxu0 %v1955_v0 }
 0x1b1   : > { %v849_v30 = vpop.permute.xlu0 %848 }
 0x1b2   : > { %v2438_v31 = vpop.permute.xlu1 %838 }
 0x1b6   : > { %v872_v32 = vpop.permute.xlu0 %871 }
 0x1b7   : > { %v2440_v33 = vpop.permute.xlu1 %843 }
 0x1ba   : > { %v829_v35 = vpop.permute.xlu0 %828 }
 0x1bb   : > { %v834_v43 = vpop.permute.xlu1 %833 }
 0x208   : > { %v682_v34 = vpop.f32.mrb[0].mxu1 }
 0x209   : > { %v792_v36 = vpop.f32.mrb[0].mxu0  ;;  %v684_v37 = vpop.f32.mrb[1].mxu1 }
 0x20a   : > { %v793_v38 = vadd.f32 %v792_v36, %v682_v34  ;;  %v794_v39 = vpop.f32.mrb[1].mxu0 }
 0x20b   : > { %v795_v40 = vadd.f32 %v794_v39, %v684_v37 }
 0x20c   : > { %v851_v41 = vadd.f32 %v829_v35, %v793_v38  ;;  %v688_v42 = vpop.f32.mrb[2].mxu1 }
 0x20d   : > { %v852_v44 = vadd.f32 %v829_v35, %v795_v40  ;;  %v798_v45 = vpop.f32.mrb[2].mxu0  ;;  %v690_v46 = vpop.f32.mrb[3].mxu1 }
 0x20e   : > { %861 = vst [vmem:[%s2443_s19] sm:$0xff] %v851_v41  ;;  %v799_v47 = vadd.f32 %v798_v45, %v688_v42  ;;  %v800_v48 = vpop.f32.mrb[3].mxu0 }
 0x20f   : > { %862 = vst [vmem:[%s2443_s19 + $0x8] sm:$0xff] %v852_v44  ;;  %v801_v49 = vadd.f32 %v800_v48, %v690_v46 }
 0x210   : > { %v853_v50 = vadd.f32 %v834_v43, %v799_v47  ;;  %v2447_v51 = vpop.f32.mrb[4].mxu1 }
 0x211   : > { %v854_v52 = vadd.f32 %v834_v43, %v801_v49  ;;  %v2449_v53 = vpop.f32.mrb[5].mxu1 }
 0x212   : > { %863 = vst [vmem:[%s2443_s19 + $0x10] sm:$0xff] %v853_v50 }
 0x213   : > { %864 = vst [vmem:[%s2443_s19 + $0x18] sm:$0xff] %v854_v52 }
 0x214   : > { %v2453_v54 = vpop.f32.mrb[6].mxu1 }
 0x215   : > { %v2455_v55 = vpop.f32.mrb[7].mxu1 }
 0x218   : > { %v706_v56 = vpop.f32.mrb[8].mxu1 }
 0x219   : > { %v816_v57 = vpop.f32.mrb[8].mxu0  ;;  %v708_v58 = vpop.f32.mrb[9].mxu1 }
 0x21a   : > { %v817_v59 = vadd.f32 %v816_v57, %v706_v56  ;;  %v818_v60 = vpop.f32.mrb[9].mxu0 }
 0x21b   : > { %v819_v61 = vadd.f32 %v818_v60, %v708_v58 }
 0x21c   : > { %v859_v62 = vadd.f32 %v849_v30, %v817_v59 }
 0x21d   : > { %v860_v63 = vadd.f32 %v849_v30, %v819_v61 }
 0x21e   : > { %v865_v2 = vmax.f32 %v859_v62, 0.0 }
 0x21f   : > { %v866_v1 = vmax.f32 %v860_v63, 0.0 }
 0x221   : > { %878 = vmatprep.subr.mxu1 %v866_v1 }
 0x222   : > { %879 = vmatpush1.msra.mxu1 %v865_v2 }
 0x223   : > { %1362 = vmatmul.mubr.msk.f32.vlgmr.msra.gmra.mrb[10].mxu1 %vm874_vm1, %v867_v3 }
 0x2f6   : > { %v944_v4 = vpop.f32.mrb[10].mxu1 }
 0x2f7   : > { %v945_v5 = vadd.f32 %v944_v4, %v872_v32  ;;  %v946_v6 = vpop.f32.mrb[11].mxu1 }
 0x2f8   : > { %v947_v7 = vadd.f32 %v946_v6, %v872_v32 }
 0x2f9   : > { %v949_v8 = vmax.f32 %v945_v5, 0.0 }
 0x2fa   : > { %v950_v9 = vmax.f32 %v947_v7, 0.0 }
 0x2fb   : > { %v953_v11 = vadd.f32 %v949_v8, %v865_v2 }
 0x2fc   : > { %v954_v10 = vadd.f32 %v950_v9, %v866_v1 }
 0x2fe   : > { %961 = vmatprep.subr.mxu0 %v954_v10 }
 0x2ff   : > { %962 = vmatpush1.msra.mxu0 %v953_v11 }
 0x300   : > { %1363 = vmatmul.mubr.msk.f32.vlgmr.msra.gmra.mrb[4].mxu0 %vm874_vm1, %v951_v12 }
 0x301   : > { %1031 = vmatprep.mubr.f32.mxu0 %v1955_v0 }
 0x304   : > { %1364 = vmatmul.mubr.msk.f32.gmra.mrb[6].mxu0 %vm874_vm1, %v952_v13 }
 0x305   : > { %1823 = shalt.err (!%p1820_p0)
}
 0x306   : > { %s1824_s3 = scalar_lea.hbm %s2470_s28, 512  ;;  %s1828_s21 = scalar_lea.hbm %s2664_s26, 1024 }
 0x307   : > { %p1825_p2 = scmp.ne.s32.totalorder %s2470_s28, %s1824_s3  ;;  %p1829_p4 = scmp.lt.u32.totalorder %s2470_s28, %s2664_s26 }
 0x308   : > { %p1830_p7 = scmp.lt.u32.totalorder %s1828_s21, %s1824_s3  ;;  %p1832_p3 = scmp.lt.u32.totalorder %s1824_s3, %s2470_s28 }
 0x309   : > { %p1826_p11 = pnand %p1825_p2, %p2665_p5 }
 0x30a   : > { %p1831_p8 = por %p1830_p7, %p1829_p4 }
 0x30b   : > { %p1827_p13 = pneg %p1826_p11 }
 0x30c   : > { %p1833_p12 = por %p1832_p3, %p1831_p8 }
 0x30e   : > { %p1834_p1 = pnand %p1833_p12, %p1827_p13 }
 0x310   : > { %1837 = shalt.err (!%p1834_p1)
}
 0x311   : > { %s1958_s13 = smov 256   ;;  %s1959_s19 = smov 16   ;;  %v1390_v0 = vadd.f32 %v2438_v31, %v2447_v51  ;;  %v1392_v14 = vadd.f32 %v2438_v31, %v2449_v53  ;;  %v1042_v16 = vld [vmem:[%s2398_s23] sm:$0xff]  ;;  %v1043_v19 = vld [vmem:[%s2398_s23 + $0x8] sm:$0xff]  ;;  %v1394_v21 = vadd.f32 %v2440_v33, %v2453_v54  ;;  %v1396_v23 = vadd.f32 %v2440_v33, %v2455_v55  ;;  %v1044_v26 = vld [vmem:[%s2398_s23 + $0x10] sm:$0xff] }
 0x312   : > { %1434 = dma.vmem_to_hbm [thread:$0]  (%p2665_p5), %s2462_s18, 512, %s2470_s28, %s1055_s1, %s1958_s13, %s1958_s13, %s1959_s19  }
 0x313   : > { %s576_s18 = scalar_lea.vmem [#allocation18], %s2381_s5  ;;  %v1045_v29 = vld [vmem:[%s2398_s23 + $0x18] sm:$0xff]  ;;  %s2666_s28 = sld [smem:[#allocation41_spill]] }
 0x314   : > { %s1093_s30 = sshll.u32 %s576_s18, 4  ;;  %s1060_s12 = scalar_lea.sflag [#allocation19], %s2378_s9  ;;  %s2512_s30 = int_to_ptr.vmem [resolvable:$true] %s1093_s30 }
 0x315   : > { %s1838_s25 = scalar_lea.vmem %s2512_s30, 512  ;;  %s1960_s23 = smov [#allocation18]  }
 0x316   : > { %p1839_p9 = scmp.ne.s32.totalorder %s2512_s30, %s1838_s25  ;;  %s1842_s16 = sshll.u32 %s1960_s23, 4  ;;  %s1843_s16 = int_to_ptr.vmem [resolvable:$false] %s1842_s16 }
 0x317   : > { %s1844_s24 = scalar_lea.vmem %s1843_s16, 1024  ;;  %p1845_p0 = scmp.lt.s32.totalorder %s2512_s30, %s1843_s16 }
 0x318   : > { %p1840_p10 = pnand %p1839_p9, %p2665_p5  ;;  %p1846_p2 = scmp.lt.s32.totalorder %s1844_s24, %s1838_s25 }
 0x319   : > { %s2519_s1 = scalar_lea.hbm %s2666_s28, %s1376_s20 }
 0x31a   : > { %p1841_p6 = pneg %p1840_p10  ;;  %p1847_p11 = por %p1846_p2, %p1845_p0 }
 0x31c   : > { %p1848_p13 = pnand %p1847_p11, %p1841_p6 }
 0x3d3   : > { %v1027_v15 = vpop.f32.mrb[4].mxu0 }
 0x3d4   : > { %v1391_v17 = vadd.f32 %v1390_v0, %v1027_v15  ;;  %v1029_v18 = vpop.f32.mrb[5].mxu0 }
 0x3d5   : > { %v1393_v20 = vadd.f32 %v1392_v14, %v1029_v18 }
 0x3d6   : > { %v1046_v22 = vadd.f32 %v1391_v17, %v1042_v16 }
 0x3d7   : > { %v1047_v24 = vadd.f32 %v1393_v20, %v1043_v19  ;;  %v1033_v25 = vpop.f32.mrb[6].mxu0 }
 0x3d8   : > { %1050 = vst [vmem:[%s576_s18] sm:$0xff] %v1046_v22  ;;  %v1395_v27 = vadd.f32 %v1394_v21, %v1033_v25  ;;  %v1035_v28 = vpop.f32.mrb[7].mxu0 }
 0x3d9   : > { %1051 = vst [vmem:[%s576_s18 + $0x8] sm:$0xff] %v1047_v24  ;;  %v1397_v30 = vadd.f32 %v1396_v23, %v1035_v28 }
 0x3da   : > { %v1048_v31 = vadd.f32 %v1395_v27, %v1044_v26 }
 0x3db   : > { %v1049_v32 = vadd.f32 %v1397_v30, %v1045_v29 }
 0x3dc   : > { %1052 = vst [vmem:[%s576_s18 + $0x10] sm:$0xff] %v1048_v31 }
 0x3dd   : > { %1053 = vst [vmem:[%s576_s18 + $0x18] sm:$0xff] %v1049_v32 }
 0x3de   : > { %1851 = shalt.err (!%p1848_p13)
}
 0x3df   : > { %s1852_s27 = scalar_lea.hbm %s2519_s1, 512  ;;  %s1856_s29 = scalar_lea.hbm %s2666_s28, 1024 }
 0x3e0   : > { %p1853_p4 = scmp.ne.s32.totalorder %s2519_s1, %s1852_s27  ;;  %p1857_p3 = scmp.lt.u32.totalorder %s2519_s1, %s2666_s28 }
 0x3e1   : > { %p1858_p12 = scmp.lt.u32.totalorder %s1856_s29, %s1852_s27  ;;  %p1860_p9 = scmp.lt.u32.totalorder %s1852_s27, %s2519_s1 }
 0x3e2   : > { %p1854_p7 = pnand %p1853_p4, %p2665_p5 }
 0x3e3   : > { %p1859_p1 = por %p1858_p12, %p1857_p3 }
 0x3e4   : > { %p1855_p8 = pneg %p1854_p7 }
 0x3e5   : > { %p1861_p10 = por %p1860_p9, %p1859_p1 }
 0x3e7   : > { %p1862_p6 = pnand %p1861_p10, %p1855_p8 }
 0x3e9   : > { %1865 = shalt.err (!%p1862_p6)
}
 0x3ea   : > { %1435 = dma.vmem_to_hbm [thread:$0]  (%p2665_p5), %s2512_s30, 512, %s2519_s1, %s1060_s12, %s1958_s13, %s1958_s13, %s1959_s19  }
 0x3eb PF: > { %s2667_s7 = sld [smem:[#allocation27_spill]]  ;;  %s2668_s11 = sld [smem:[#allocation35_spill]] }
 0x3ec   : > { %s2669_s18 = sld [smem:[#allocation30_spill]] }
 0x3f1   : > { %s1108_s5 = sand.u32 1, %s2667_s7   ;;  %p2670_p0 = scmp.ne.s32.totalorder %s2668_s11, 0 }
 0x3f2   : > { %p2671_p2 = scmp.ge.s32.totalorder %s2669_s18, 2  ;;  %s1109_s22 = scalar_lea.sflag [#allocation4], %s1108_s5 }
 0x3f4   : > { %p1468_p11 = pnand %p2671_p2, %p2670_p0 }
 0x3f6   : > { %1911 = dma.done.wait (!%p1468_p11), %s1109_s22, 512  }
 0x3f7   : > { %1913 = vsyncadd (!%p1468_p11), %s1109_s22, 4294966784  ;;  %s1118_s17 = scalar_lea.sflag [#allocation19], %s1108_s5 }
 0x3f8   : > { %1915 = dma.done.wait (!%p1468_p11), %s1118_s17, 512  }
 0x3f9   : > { %1917 = vsyncadd (!%p1468_p11), %s1118_s17, 4294966784  ;;  %s36_s18 = sadd.s32 1, %s2669_s18   ;;  %s2672_s9 = sld [smem:[#allocation34_spill]] }
 0x3fa   : > { %p33_p13 = scmp.ge.s32.totalorder %s36_s18, 4   ;;  %s2673_s16 = sld [smem:[#allocation29_spill]] }
 0x3fb   : > { %s2674_s17 = sld [smem:[#allocation32_spill]]  ;;  %s2675_s13 = smov %s1924_s14 }
 0x3fc   : > { %s2676_s14 = smov %s1928_s15  ;;  %35 = sbr.rel (!%p33_p13) target bundleno = 20 (0x14), region = 166 }
 0x3ff   : > { %s2677_s15 = smov %s2672_s9 }
 0x403   :  { %1123 = vsyncpa [#allocation3], 1 }
 0x404   :  { %1125 = vsyncpa [#allocation3 + $0x1], 1 }
 0x405   :  { %1126 = vsyncpa [#allocation6], 1 }
 0x406   :  { %1128 = vsyncpa [#allocation6 + $0x1], 1 }
 0x407   :  { %1129 = vsyncpa [#allocation9], 1 }
 0x408   :  { %1130 = vsyncpa [#allocation12], 1 }
 0x409   :  { %1131 = vsyncpa [#allocation15], 1 }
 0x40a   :  { %1132 = vsyncpa [#allocation4], 1 }
 0x40b   :  { %1134 = vsyncpa [#allocation4 + $0x1], 1 }
 0x40c   :  { %1135 = vsyncpa [#allocation19], 1 }
 0x40d   :  { %1137 = vsyncpa [#allocation19 + $0x1], 1 }

</bundles_post_ra>
